<compile_context>
chip_gen: v7x
topology: tpu7x:2x2x1
jax: 0.10.0
libtpu: 0.0.40
codegen_flags: <defaults>
</compile_context>

<pallas_src>
import functools

import jax
import jax.numpy as jnp
from jax.experimental import pallas as pl
from jax.experimental.pallas import tpu as pltpu

# ---------------- config (small, consistent with the module structure) -------
IMG = 16          # input spatial size
IN_CH = 3         # RGB
PATCH = 8         # patch size -> 2x2 = 4 patches
EMBED = 32        # transformer width
HEADS = 4
HEAD_DIM = EMBED // HEADS
MLP_DIM = 4 * EMBED
DEPTH = 2
OUT_DIM = 32      # backbone output_dim (512 in real BioCLIP)
NUM_CLASSES = 14
BN_EPS = 1e-5
LN_EPS = 1e-5
LOGIT_PAD = 128   # lane-dense padded width for the classifier output tile


# ---------------- fused Pallas forward kernel ---------------------------------
def _layernorm(x, g, b):
    mu = jnp.mean(x, axis=-1, keepdims=True)
    xc = x - mu
    var = jnp.mean(xc * xc, axis=-1, keepdims=True)
    return xc * jax.lax.rsqrt(var + LN_EPS) * g + b


def _fused_forward_kernel(
        # backbone inputs
        patches_ref, patch_w_ref, base_tok_ref, attn_bias_ref, global_ln_ref,
        wqkv_ref, wo_ref, wfc_ref, wproj_ref, layer_vec_ref, proj_ref,
        # classifier-head inputs
        w1_ref, w2_ref, w3_ref, head_vec_ref,
        # output
        out_ref,
        *, batch, depth):
    scale = 1.0 / (HEAD_DIM ** 0.5)

    # ---- patch embedding (conv1 stride=kernel, bias=False) + cls/pos --------
    # patches_ref already has `batch` leading zero rows (cls slots), so the
    # matmul result lands directly in sequence-row order; base_tok carries
    # cls + pos[0] on cls rows and pos[t] on patch rows.
    tok = jnp.dot(patches_ref[...], patch_w_ref[...],
                  preferred_element_type=jnp.float32)                 # [R, E]
    h = tok + base_tok_ref[...]

    gln = global_ln_ref[...]                                          # [4, E]
    h = _layernorm(h, gln[0:1, :], gln[1:2, :])                       # ln_pre

    # hoisted in-kernel constants
    lane = jax.lax.broadcasted_iota(jnp.int32, (1, EMBED), 1)
    head_masks = [
        ((lane >= hd * HEAD_DIM) & (lane < (hd + 1) * HEAD_DIM)).astype(jnp.float32)
        for hd in range(HEADS)
    ]
    attn_bias = attn_bias_ref[...]            # [R, R]: 0 same-image, -1e30 cross

    for d in range(depth):
        lv = layer_vec_ref[d]                                         # [8, 128]
        ln1_g = lv[0:1, :EMBED]
        ln1_b = lv[1:2, :EMBED]
        ln2_g = lv[2:3, :EMBED]
        ln2_b = lv[3:4, :EMBED]
        bqkv = lv[4:5, :3 * EMBED]
        bo = lv[5:6, :EMBED]
        bfc = lv[6:7, :MLP_DIM]
        bpr = lv[7:8, :EMBED]

        # --- attention sub-block: pre-LN -> fused QKV -> SDPA -> out + resid -
        y = _layernorm(h, ln1_g, ln1_b)
        qkv = jnp.dot(y, wqkv_ref[d],
                      preferred_element_type=jnp.float32) + bqkv      # [R, 3E]
        q = qkv[:, :EMBED]
        k = qkv[:, EMBED:2 * EMBED]
        v = qkv[:, 2 * EMBED:3 * EMBED]
        attn = jnp.zeros_like(h)
        for hd in range(HEADS):
            m = head_masks[hd]
            # masked-lane trick: contraction stays full-width (E=32 lanes);
            # one mask is enough since (q*m).(k*m) == q.(k*m) for 0/1 m.
            s = jax.lax.dot_general(q, k * m, (((1,), (1,)), ((), ())),
                                    preferred_element_type=jnp.float32)
            s = s * scale + attn_bias
            s = s - jnp.max(s, axis=-1, keepdims=True)
            p = jnp.exp(s)
            # deferred softmax normalization: fold the [R,1] reciprocal of the
            # row sum (EUP slot) into the existing head-mask multiply.
            inv = pl.reciprocal(jnp.sum(p, axis=-1, keepdims=True), approx=True)
            attn = attn + jnp.dot(p, v,
                                  preferred_element_type=jnp.float32) * (m * inv)
        h = h + jnp.dot(attn, wo_ref[d],
                        preferred_element_type=jnp.float32) + bo

        # --- MLP sub-block: pre-LN -> fc -> GELU -> proj + residual ----------
        y = _layernorm(h, ln2_g, ln2_b)
        y = jnp.dot(y, wfc_ref[d], preferred_element_type=jnp.float32) + bfc
        # TODO(synk): torch nn.GELU defaults to exact erf; tanh approximation is
        # used here (safe Mosaic lowering), logits differ slightly.
        y = jax.nn.gelu(y, approximate=True)
        h = h + jnp.dot(y, wproj_ref[d],
                        preferred_element_type=jnp.float32) + bpr

    # ---- post-LN, cls-token gather (cls rows are the first B rows), proj ----
    h = _layernorm(h, gln[2:3, :], gln[3:4, :])
    cls_f = h[:batch, :]                                               # [B, E]
    feat = jnp.dot(cls_f, proj_ref[...],
                   preferred_element_type=jnp.float32)                 # [B, OUT]

    # ---- classifier head (inference: Dropout = identity, BN = running stats)
    hv = head_vec_ref[...]                                             # [5, 128]
    # F.normalize(dim=-1): x * rsqrt(max(||x||^2, eps^2)) == x / max(||x||, eps)
    sq = jnp.sum(feat * feat, axis=-1, keepdims=True)
    feat = feat * jax.lax.rsqrt(jnp.maximum(sq, 1e-24))
    h1 = jnp.dot(feat, w1_ref[...], preferred_element_type=jnp.float32)  # no bias
    h1 = jnp.maximum(h1 * hv[0:1, :2 * OUT_DIM] + hv[1:2, :2 * OUT_DIM], 0.0)
    h2 = jnp.dot(h1, w2_ref[...], preferred_element_type=jnp.float32)    # no bias
    h2 = jnp.maximum(h2 * hv[2:3, :OUT_DIM] + hv[3:4, :OUT_DIM], 0.0)
    logits = jnp.dot(h2, w3_ref[...],
                     preferred_element_type=jnp.float32) + hv[4:5, :]
    out_ref[...] = logits.astype(out_ref.dtype)      # [B, 128] lane-dense tile


def _full_spec(shape):
    nd = len(shape)
    return pl.BlockSpec(shape, lambda i, _nd=nd: (0,) * _nd)


# ---------------- one-time prep: weight packing + layout constants ------------
def prepare_params(params, batch, img=IMG):
    """Done ONCE at parameter-load time (not per forward call)."""
    bb = params["backbone"]
    hp = params["head"]
    gh = gw = img // PATCH
    NP = gh * gw

    # token layout: rows [0..B-1] = cls tokens, rows [B + b*NP + p] = patches.
    pos = bb["pos"][0]                                        # [T, E]
    base_cls = jnp.tile(bb["cls"][0] + pos[0:1], (batch, 1))  # [B, E]
    base_patch = jnp.tile(pos[1:], (batch, 1))                # [B*NP, E]
    base_tok = jnp.concatenate([base_cls, base_patch], axis=0)

    b_of = jnp.concatenate([jnp.arange(batch),
                            jnp.repeat(jnp.arange(batch), NP)])
    same = b_of[:, None] == b_of[None, :]
    attn_bias = jnp.where(same, 0.0, -1e30).astype(jnp.float32)

    def pad128(v):
        return jnp.zeros((128,), jnp.float32).at[:v.shape[0]].set(v)

    blocks = bb["blocks"]
    wqkv = jnp.stack([blk["wqkv"] for blk in blocks])          # [D, E, 3E]
    wo = jnp.stack([blk["wo"] for blk in blocks])              # [D, E, E]
    wfc = jnp.stack([blk["w_fc"] for blk in blocks])           # [D, E, 4E]
    wproj = jnp.stack([blk["w_proj"] for blk in blocks])       # [D, 4E, E]
    layer_vec = jnp.stack([
        jnp.stack([pad128(blk["ln1_g"]), pad128(blk["ln1_b"]),
                   pad128(blk["ln2_g"]), pad128(blk["ln2_b"]),
                   pad128(blk["bqkv"]), pad128(blk["bo"]),
                   pad128(blk["b_fc"]), pad128(blk["b_proj"])])
        for blk in blocks])                                    # [D, 8, 128]
    global_ln = jnp.stack([bb["ln_pre_g"], bb["ln_pre_b"],
                           bb["ln_post_g"], bb["ln_post_b"]])  # [4, E]

    # fold BatchNorm (running stats) into scale/offset; pad classifier to 128.
    bn1_s = hp["bn1_g"] * jax.lax.rsqrt(hp["bn1_v"] + BN_EPS)
    bn1_o = hp["bn1_b"] - hp["bn1_m"] * bn1_s
    bn2_s = hp["bn2_g"] * jax.lax.rsqrt(hp["bn2_v"] + BN_EPS)
    bn2_o = hp["bn2_b"] - hp["bn2_m"] * bn2_s
    head_vec = jnp.stack([pad128(bn1_s), pad128(bn1_o),
                          pad128(bn2_s), pad128(bn2_o),
                          pad128(hp["b3"])])                   # [5, 128]
    w3p = jnp.zeros((OUT_DIM, LOGIT_PAD), jnp.float32).at[:, :NUM_CLASSES].set(hp["w3"])

    return dict(patch_w=bb["patch_w"], base_tok=base_tok, attn_bias=attn_bias,
                global_ln=global_ln, wqkv=wqkv, wo=wo, wfc=wfc, wproj=wproj,
                layer_vec=layer_vec, proj=bb["proj"],
                w1=hp["w1"], w2=hp["w2"], w3=w3p, head_vec=head_vec)


# ---------------- wrapper: glue (layout only) + ONE pallas_call ---------------
def classifying_model(x, prep):
    B, C, H, W = x.shape
    gh, gw = H // PATCH, W // PATCH
    NP = gh * gw
    R = B * (NP + 1)

    # glue: patch extraction (pure reshape/transpose, NCHW -> [B*NP, C*P*P]),
    # then B leading zero rows so patch tokens land after the cls slots.
    patches = (x.reshape(B, C, gh, PATCH, gw, PATCH)
                 .transpose(0, 2, 4, 1, 3, 5)
                 .reshape(B * NP, C * PATCH * PATCH))
    patches_full = jnp.concatenate(
        [jnp.zeros((B, patches.shape[1]), patches.dtype), patches], axis=0)

    inputs = [patches_full, prep["patch_w"], prep["base_tok"], prep["attn_bias"],
              prep["global_ln"], prep["wqkv"], prep["wo"], prep["wfc"],
              prep["wproj"], prep["layer_vec"], prep["proj"],
              prep["w1"], prep["w2"], prep["w3"], prep["head_vec"]]

    # advisory cost estimate so XLA can schedule the glue around the kernel
    E, M = EMBED, MLP_DIM
    flops = 2 * R * patches_full.shape[1] * E
    flops += DEPTH * (2 * R * E * 3 * E + HEADS * 4 * R * R * E
                      + 2 * R * E * E + 2 * R * E * M + 2 * R * M * E)
    flops += 2 * B * (E * OUT_DIM + OUT_DIM * 2 * OUT_DIM
                      + 2 * OUT_DIM * OUT_DIM + OUT_DIM * LOGIT_PAD)
    transcendentals = DEPTH * (HEADS * R * (R + 1) + R * M) + (2 * DEPTH + 2) * R + B
    bytes_accessed = sum(int(a.size) * a.dtype.itemsize for a in inputs) + B * LOGIT_PAD * 4

    kernel = functools.partial(_fused_forward_kernel, batch=B, depth=DEPTH)
    logits_pad = pl.pallas_call(
        kernel,
        out_shape=jax.ShapeDtypeStruct((B, LOGIT_PAD), jnp.float32),
        grid=(1,),
        in_specs=[_full_spec(a.shape) for a in inputs],
        out_specs=_full_spec((B, LOGIT_PAD)),
        compiler_params=pltpu.CompilerParams(dimension_semantics=("arbitrary",)),
        cost_estimate=pl.CostEstimate(flops=int(flops),
                                      transcendentals=int(transcendentals),
                                      bytes_accessed=int(bytes_accessed)),
    )(*inputs)
    return logits_pad[:, :NUM_CLASSES]


# ---------------- deterministic parameter init --------------------------------
def init_params(key):
    def nrm(k, shape, scale=0.02):
        return scale * jax.random.normal(k, shape, jnp.float32)

    keys = iter(jax.random.split(key, 64))
    blocks = []
    for _ in range(DEPTH):
        blocks.append(dict(
            ln1_g=jnp.ones((EMBED,), jnp.float32), ln1_b=jnp.zeros((EMBED,), jnp.float32),
            wqkv=nrm(next(keys), (EMBED, 3 * EMBED)), bqkv=jnp.zeros((3 * EMBED,), jnp.float32),
            wo=nrm(next(keys), (EMBED, EMBED)), bo=jnp.zeros((EMBED,), jnp.float32),
            ln2_g=jnp.ones((EMBED,), jnp.float32), ln2_b=jnp.zeros((EMBED,), jnp.float32),
            w_fc=nrm(next(keys), (EMBED, MLP_DIM)), b_fc=jnp.zeros((MLP_DIM,), jnp.float32),
            w_proj=nrm(next(keys), (MLP_DIM, EMBED)), b_proj=jnp.zeros((EMBED,), jnp.float32),
        ))
    backbone = dict(
        patch_w=nrm(next(keys), (IN_CH * PATCH * PATCH, EMBED)),
        cls=nrm(next(keys), (1, 1, EMBED)),
        pos=nrm(next(keys), (1, (IMG // PATCH) ** 2 + 1, EMBED)),
        ln_pre_g=jnp.ones((EMBED,), jnp.float32), ln_pre_b=jnp.zeros((EMBED,), jnp.float32),
        blocks=blocks,
        ln_post_g=jnp.ones((EMBED,), jnp.float32), ln_post_b=jnp.zeros((EMBED,), jnp.float32),
        proj=nrm(next(keys), (EMBED, OUT_DIM)),
    )
    head = dict(
        w1=nrm(next(keys), (OUT_DIM, 2 * OUT_DIM)),
        bn1_g=jnp.ones((2 * OUT_DIM,), jnp.float32), bn1_b=jnp.zeros((2 * OUT_DIM,), jnp.float32),
        bn1_m=nrm(next(keys), (2 * OUT_DIM,), 0.1),
        bn1_v=jnp.ones((2 * OUT_DIM,), jnp.float32) + jnp.abs(nrm(next(keys), (2 * OUT_DIM,), 0.1)),
        w2=nrm(next(keys), (2 * OUT_DIM, OUT_DIM)),
        bn2_g=jnp.ones((OUT_DIM,), jnp.float32), bn2_b=jnp.zeros((OUT_DIM,), jnp.float32),
        bn2_m=nrm(next(keys), (OUT_DIM,), 0.1),
        bn2_v=jnp.ones((OUT_DIM,), jnp.float32) + jnp.abs(nrm(next(keys), (OUT_DIM,), 0.1)),
        w3=nrm(next(keys), (OUT_DIM, NUM_CLASSES)),
        b3=jnp.zeros((NUM_CLASSES,), jnp.float32),
    )
    return dict(backbone=backbone, head=head)


if __name__ == "__main__":
    key = jax.random.PRNGKey(0)
    pkey, xkey = jax.random.split(key)
    params = init_params(pkey)
    x = jax.random.normal(xkey, (2, IN_CH, IMG, IMG), jnp.float32)   # NCHW

    # one-time weight packing / layout-constant construction (outside the jit)
    prep = jax.tree_util.tree_map(jax.block_until_ready,
                                  prepare_params(params, batch=x.shape[0]))

    fwd = jax.jit(classifying_model)
    out = jax.block_until_ready(fwd(x, prep))
    assert out.shape == (2, NUM_CLASSES), out.shape
    assert bool(jnp.all(jnp.isfinite(out)))
    print("KERNEL_OK")
</pallas_src>

<mosaic_0001>
module attributes {stable_mosaic.version = 11 : i64} {
  func.func @_fused_forward_kernel(%arg0: i32, %arg1: memref<10x192xf32, #tpu.memory_space<vmem>>, %arg2: memref<192x32xf32, #tpu.memory_space<vmem>>, %arg3: memref<10x32xf32, #tpu.memory_space<vmem>>, %arg4: memref<10x10xf32, #tpu.memory_space<vmem>>, %arg5: memref<4x32xf32, #tpu.memory_space<vmem>>, %arg6: memref<2x32x96xf32, #tpu.memory_space<vmem>>, %arg7: memref<2x32x32xf32, #tpu.memory_space<vmem>>, %arg8: memref<2x32x128xf32, #tpu.memory_space<vmem>>, %arg9: memref<2x128x32xf32, #tpu.memory_space<vmem>>, %arg10: memref<2x8x128xf32, #tpu.memory_space<vmem>>, %arg11: memref<32x32xf32, #tpu.memory_space<vmem>>, %arg12: memref<32x64xf32, #tpu.memory_space<vmem>>, %arg13: memref<64x32xf32, #tpu.memory_space<vmem>>, %arg14: memref<32x128xf32, #tpu.memory_space<vmem>>, %arg15: memref<5x128xf32, #tpu.memory_space<vmem>>, %arg16: memref<2x128xf32, #tpu.memory_space<vmem>>) attributes {dimension_semantics = [#tpu.dimension_semantics<arbitrary>], iteration_bounds = array<i64: 1>, scalar_prefetch = 0 : i64, scratch_operands = 0 : i64, tpu.core_type = #tpu.core_type<tc>, window_params = [{pipeline_mode = #tpu.pipeline_mode<synchronous>, transform_indices = @transform_0, window_bounds = array<i64: 10, 192>}, {pipeline_mode = #tpu.pipeline_mode<synchronous>, transform_indices = @transform_1, window_bounds = array<i64: 192, 32>}, {pipeline_mode = #tpu.pipeline_mode<synchronous>, transform_indices = @transform_2, window_bounds = array<i64: 10, 32>}, {pipeline_mode = #tpu.pipeline_mode<synchronous>, transform_indices = @transform_3, window_bounds = array<i64: 10, 10>}, {pipeline_mode = #tpu.pipeline_mode<synchronous>, transform_indices = @transform_4, window_bounds = array<i64: 4, 32>}, {pipeline_mode = #tpu.pipeline_mode<synchronous>, transform_indices = @transform_5, window_bounds = array<i64: 2, 32, 96>}, {pipeline_mode = #tpu.pipeline_mode<synchronous>, transform_indices = @transform_6, window_bounds = array<i64: 2, 32, 32>}, {pipeline_mode = #tpu.pipeline_mode<synchronous>, transform_indices = @transform_7, window_bounds = array<i64: 2, 32, 128>}, {pipeline_mode = #tpu.pipeline_mode<synchronous>, transform_indices = @transform_8, window_bounds = array<i64: 2, 128, 32>}, {pipeline_mode = #tpu.pipeline_mode<synchronous>, transform_indices = @transform_9, window_bounds = array<i64: 2, 8, 128>}, {pipeline_mode = #tpu.pipeline_mode<synchronous>, transform_indices = @transform_10, window_bounds = array<i64: 32, 32>}, {pipeline_mode = #tpu.pipeline_mode<synchronous>, transform_indices = @transform_11, window_bounds = array<i64: 32, 64>}, {pipeline_mode = #tpu.pipeline_mode<synchronous>, transform_indices = @transform_12, window_bounds = array<i64: 64, 32>}, {pipeline_mode = #tpu.pipeline_mode<synchronous>, transform_indices = @transform_13, window_bounds = array<i64: 32, 128>}, {pipeline_mode = #tpu.pipeline_mode<synchronous>, transform_indices = @transform_14, window_bounds = array<i64: 5, 128>}, {pipeline_mode = #tpu.pipeline_mode<synchronous>, transform_indices = @transform_15, window_bounds = array<i64: 2, 128>}]} {
    %c0 = arith.constant 0 : index
    %c0_0 = arith.constant 0 : index
    %0 = vector.load %arg1[%c0, %c0_0] : memref<10x192xf32, #tpu.memory_space<vmem>>, vector<10x192xf32>
    %c0_1 = arith.constant 0 : index
    %c0_2 = arith.constant 0 : index
    %1 = vector.load %arg2[%c0_1, %c0_2] : memref<192x32xf32, #tpu.memory_space<vmem>>, vector<192x32xf32>
    %cst = arith.constant dense<0.000000e+00> : vector<10x32xf32>
    %2 = tpu.matmul %0, %1, %cst {dimension_numbers = #tpu.dot_dimension_numbers<[1], [0], [0], [1], [0, 0, 1, 1], [], []>} : vector<10x192xf32>, vector<192x32xf32>, vector<10x32xf32> -> vector<10x32xf32>
    %c0_3 = arith.constant 0 : index
    %c0_4 = arith.constant 0 : index
    %3 = vector.load %arg3[%c0_3, %c0_4] : memref<10x32xf32, #tpu.memory_space<vmem>>, vector<10x32xf32>
    %4 = arith.addf %2, %3 : vector<10x32xf32>
    %c0_5 = arith.constant 0 : index
    %c0_6 = arith.constant 0 : index
    %5 = vector.load %arg5[%c0_5, %c0_6] : memref<4x32xf32, #tpu.memory_space<vmem>>, vector<4x32xf32>
    %6 = vector.extract_strided_slice %5 {offsets = [0, 0], sizes = [1, 32], strides = [1, 1]} : vector<4x32xf32> to vector<1x32xf32>
    %7 = vector.extract_strided_slice %5 {offsets = [1, 0], sizes = [1, 32], strides = [1, 1]} : vector<4x32xf32> to vector<1x32xf32>
    %cst_7 = arith.constant dense<0.000000e+00> : vector<10xf32>
    %8 = vector.multi_reduction <add>, %4, %cst_7 [1] : vector<10x32xf32> to vector<10xf32>
    %9 = vector.shape_cast %8 : vector<10xf32> to vector<10x1xf32>
    %cst_8 = arith.constant 3.200000e+01 : f32
    %10 = vector.broadcast %cst_8 : f32 to vector<10x1xf32>
    %11 = arith.divf %9, %10 : vector<10x1xf32>
    %12 = vector.broadcast %11 : vector<10x1xf32> to vector<10x32xf32>
    %13 = arith.subf %4, %12 : vector<10x32xf32>
    %14 = arith.mulf %13, %13 : vector<10x32xf32>
    %cst_9 = arith.constant dense<0.000000e+00> : vector<10xf32>
    %15 = vector.multi_reduction <add>, %14, %cst_9 [1] : vector<10x32xf32> to vector<10xf32>
    %16 = vector.shape_cast %15 : vector<10xf32> to vector<10x1xf32>
    %cst_10 = arith.constant 3.200000e+01 : f32
    %17 = vector.broadcast %cst_10 : f32 to vector<10x1xf32>
    %18 = arith.divf %16, %17 : vector<10x1xf32>
    %cst_11 = arith.constant 9.99999974E-6 : f32
    %19 = vector.broadcast %cst_11 : f32 to vector<10x1xf32>
    %20 = arith.addf %18, %19 : vector<10x1xf32>
    %21 = math.rsqrt %20 : vector<10x1xf32>
    %22 = vector.broadcast %21 : vector<10x1xf32> to vector<10x32xf32>
    %23 = arith.mulf %13, %22 : vector<10x32xf32>
    %24 = vector.broadcast %6 : vector<1x32xf32> to vector<10x32xf32>
    %25 = arith.mulf %23, %24 : vector<10x32xf32>
    %26 = vector.broadcast %7 : vector<1x32xf32> to vector<10x32xf32>
    %27 = arith.addf %25, %26 : vector<10x32xf32>
    %28 = tpu.iota {dimensions = array<i32: 1>} : vector<1x32xi32>
    %c0_i32 = arith.constant 0 : i32
    %29 = vector.broadcast %c0_i32 : i32 to vector<1x32xi32>
    %30 = arith.cmpi sge, %28, %29 : vector<1x32xi32>
    %c8_i32 = arith.constant 8 : i32
    %31 = vector.broadcast %c8_i32 : i32 to vector<1x32xi32>
    %32 = arith.cmpi slt, %28, %31 : vector<1x32xi32>
    %33 = arith.andi %30, %32 : vector<1x32xi1>
    %34 = arith.extui %33 : vector<1x32xi1> to vector<1x32xi32>
    %35 = arith.sitofp %34 : vector<1x32xi32> to vector<1x32xf32>
    %c8_i32_12 = arith.constant 8 : i32
    %36 = vector.broadcast %c8_i32_12 : i32 to vector<1x32xi32>
    %37 = arith.cmpi sge, %28, %36 : vector<1x32xi32>
    %c16_i32 = arith.constant 16 : i32
    %38 = vector.broadcast %c16_i32 : i32 to vector<1x32xi32>
    %39 = arith.cmpi slt, %28, %38 : vector<1x32xi32>
    %40 = arith.andi %37, %39 : vector<1x32xi1>
    %41 = arith.extui %40 : vector<1x32xi1> to vector<1x32xi32>
    %42 = arith.sitofp %41 : vector<1x32xi32> to vector<1x32xf32>
    %c16_i32_13 = arith.constant 16 : i32
    %43 = vector.broadcast %c16_i32_13 : i32 to vector<1x32xi32>
    %44 = arith.cmpi sge, %28, %43 : vector<1x32xi32>
    %c24_i32 = arith.constant 24 : i32
    %45 = vector.broadcast %c24_i32 : i32 to vector<1x32xi32>
    %46 = arith.cmpi slt, %28, %45 : vector<1x32xi32>
    %47 = arith.andi %44, %46 : vector<1x32xi1>
    %48 = arith.extui %47 : vector<1x32xi1> to vector<1x32xi32>
    %49 = arith.sitofp %48 : vector<1x32xi32> to vector<1x32xf32>
    %c24_i32_14 = arith.constant 24 : i32
    %50 = vector.broadcast %c24_i32_14 : i32 to vector<1x32xi32>
    %51 = arith.cmpi sge, %28, %50 : vector<1x32xi32>
    %c32_i32 = arith.constant 32 : i32
    %52 = vector.broadcast %c32_i32 : i32 to vector<1x32xi32>
    %53 = arith.cmpi slt, %28, %52 : vector<1x32xi32>
    %54 = arith.andi %51, %53 : vector<1x32xi1>
    %55 = arith.extui %54 : vector<1x32xi1> to vector<1x32xi32>
    %56 = arith.sitofp %55 : vector<1x32xi32> to vector<1x32xf32>
    %c0_15 = arith.constant 0 : index
    %c0_16 = arith.constant 0 : index
    %57 = vector.load %arg4[%c0_15, %c0_16] : memref<10x10xf32, #tpu.memory_space<vmem>>, vector<10x10xf32>
    %c0_17 = arith.constant 0 : index
    %c0_18 = arith.constant 0 : index
    %c0_19 = arith.constant 0 : index
    %58 = vector.load %arg10[%c0_17, %c0_18, %c0_19] : memref<2x8x128xf32, #tpu.memory_space<vmem>>, vector<1x8x128xf32>
    %59 = vector.shape_cast %58 : vector<1x8x128xf32> to vector<8x128xf32>
    %60 = vector.extract_strided_slice %59 {offsets = [0, 0], sizes = [1, 32], strides = [1, 1]} : vector<8x128xf32> to vector<1x32xf32>
    %61 = vector.extract_strided_slice %59 {offsets = [1, 0], sizes = [1, 32], strides = [1, 1]} : vector<8x128xf32> to vector<1x32xf32>
    %62 = vector.extract_strided_slice %59 {offsets = [2, 0], sizes = [1, 32], strides = [1, 1]} : vector<8x128xf32> to vector<1x32xf32>
    %63 = vector.extract_strided_slice %59 {offsets = [3, 0], sizes = [1, 32], strides = [1, 1]} : vector<8x128xf32> to vector<1x32xf32>
    %64 = vector.extract_strided_slice %59 {offsets = [4, 0], sizes = [1, 96], strides = [1, 1]} : vector<8x128xf32> to vector<1x96xf32>
    %65 = vector.extract_strided_slice %59 {offsets = [5, 0], sizes = [1, 32], strides = [1, 1]} : vector<8x128xf32> to vector<1x32xf32>
    %66 = vector.extract_strided_slice %59 {offsets = [6, 0], sizes = [1, 128], strides = [1, 1]} : vector<8x128xf32> to vector<1x128xf32>
    %67 = vector.extract_strided_slice %59 {offsets = [7, 0], sizes = [1, 32], strides = [1, 1]} : vector<8x128xf32> to vector<1x32xf32>
    %cst_20 = arith.constant dense<0.000000e+00> : vector<10xf32>
    %68 = vector.multi_reduction <add>, %27, %cst_20 [1] : vector<10x32xf32> to vector<10xf32>
    %69 = vector.shape_cast %68 : vector<10xf32> to vector<10x1xf32>
    %cst_21 = arith.constant 3.200000e+01 : f32
    %70 = vector.broadcast %cst_21 : f32 to vector<10x1xf32>
    %71 = arith.divf %69, %70 : vector<10x1xf32>
    %72 = vector.broadcast %71 : vector<10x1xf32> to vector<10x32xf32>
    %73 = arith.subf %27, %72 : vector<10x32xf32>
    %74 = arith.mulf %73, %73 : vector<10x32xf32>
    %cst_22 = arith.constant dense<0.000000e+00> : vector<10xf32>
    %75 = vector.multi_reduction <add>, %74, %cst_22 [1] : vector<10x32xf32> to vector<10xf32>
    %76 = vector.shape_cast %75 : vector<10xf32> to vector<10x1xf32>
    %cst_23 = arith.constant 3.200000e+01 : f32
    %77 = vector.broadcast %cst_23 : f32 to vector<10x1xf32>
    %78 = arith.divf %76, %77 : vector<10x1xf32>
    %cst_24 = arith.constant 9.99999974E-6 : f32
    %79 = vector.broadcast %cst_24 : f32 to vector<10x1xf32>
    %80 = arith.addf %78, %79 : vector<10x1xf32>
    %81 = math.rsqrt %80 : vector<10x1xf32>
    %82 = vector.broadcast %81 : vector<10x1xf32> to vector<10x32xf32>
    %83 = arith.mulf %73, %82 : vector<10x32xf32>
    %84 = vector.broadcast %60 : vector<1x32xf32> to vector<10x32xf32>
    %85 = arith.mulf %83, %84 : vector<10x32xf32>
    %86 = vector.broadcast %61 : vector<1x32xf32> to vector<10x32xf32>
    %87 = arith.addf %85, %86 : vector<10x32xf32>
    %c0_25 = arith.constant 0 : index
    %c0_26 = arith.constant 0 : index
    %c0_27 = arith.constant 0 : index
    %88 = vector.load %arg6[%c0_25, %c0_26, %c0_27] : memref<2x32x96xf32, #tpu.memory_space<vmem>>, vector<1x32x96xf32>
    %89 = vector.shape_cast %88 : vector<1x32x96xf32> to vector<32x96xf32>
    %cst_28 = arith.constant dense<0.000000e+00> : vector<10x96xf32>
    %90 = tpu.matmul %87, %89, %cst_28 {dimension_numbers = #tpu.dot_dimension_numbers<[1], [0], [0], [1], [0, 0, 1, 1], [], []>} : vector<10x32xf32>, vector<32x96xf32>, vector<10x96xf32> -> vector<10x96xf32>
    %91 = vector.broadcast %64 : vector<1x96xf32> to vector<10x96xf32>
    %92 = arith.addf %90, %91 : vector<10x96xf32>
    %93 = vector.extract_strided_slice %92 {offsets = [0, 0], sizes = [10, 32], strides = [1, 1]} : vector<10x96xf32> to vector<10x32xf32>
    %94 = vector.extract_strided_slice %92 {offsets = [0, 32], sizes = [10, 32], strides = [1, 1]} : vector<10x96xf32> to vector<10x32xf32>
    %95 = vector.extract_strided_slice %92 {offsets = [0, 64], sizes = [10, 32], strides = [1, 1]} : vector<10x96xf32> to vector<10x32xf32>
    %cst_29 = arith.constant 0.000000e+00 : f32
    %96 = vector.broadcast %cst_29 : f32 to vector<10x32xf32>
    %97 = vector.broadcast %35 : vector<1x32xf32> to vector<10x32xf32>
    %98 = arith.mulf %94, %97 : vector<10x32xf32>
    %cst_30 = arith.constant dense<0.000000e+00> : vector<10x10xf32>
    %99 = tpu.matmul %93, %98, %cst_30 {dimension_numbers = #tpu.dot_dimension_numbers<[1], [1], [0], [0], [0, 0, 1, 0], [], []>} : vector<10x32xf32>, vector<10x32xf32>, vector<10x10xf32> -> vector<10x10xf32>
    %cst_31 = arith.constant 0.353553385 : f32
    %100 = vector.broadcast %cst_31 : f32 to vector<10x10xf32>
    %101 = arith.mulf %99, %100 : vector<10x10xf32>
    %102 = arith.addf %101, %57 : vector<10x10xf32>
    %cst_32 = arith.constant dense<0xFF800000> : vector<10xf32>
    %103 = vector.multi_reduction <maximumf>, %102, %cst_32 [1] : vector<10x10xf32> to vector<10xf32>
    %104 = vector.shape_cast %103 : vector<10xf32> to vector<10x1xf32>
    %105 = vector.broadcast %104 : vector<10x1xf32> to vector<10x10xf32>
    %106 = arith.subf %102, %105 : vector<10x10xf32>
    %107 = math.exp %106 : vector<10x10xf32>
    %cst_33 = arith.constant dense<0.000000e+00> : vector<10xf32>
    %108 = vector.multi_reduction <add>, %107, %cst_33 [1] : vector<10x10xf32> to vector<10xf32>
    %109 = vector.shape_cast %108 : vector<10xf32> to vector<10x1xf32>
    %110 = tpu.reciprocal %109 {approx = true} : vector<10x1xf32> -> vector<10x1xf32>
    %cst_34 = arith.constant dense<0.000000e+00> : vector<10x32xf32>
    %111 = tpu.matmul %107, %95, %cst_34 {dimension_numbers = #tpu.dot_dimension_numbers<[1], [0], [0], [1], [0, 0, 1, 1], [], []>} : vector<10x10xf32>, vector<10x32xf32>, vector<10x32xf32> -> vector<10x32xf32>
    %112 = vector.broadcast %35 : vector<1x32xf32> to vector<10x32xf32>
    %113 = vector.broadcast %110 : vector<10x1xf32> to vector<10x32xf32>
    %114 = arith.mulf %112, %113 : vector<10x32xf32>
    %115 = arith.mulf %111, %114 : vector<10x32xf32>
    %116 = arith.addf %96, %115 : vector<10x32xf32>
    %117 = vector.broadcast %42 : vector<1x32xf32> to vector<10x32xf32>
    %118 = arith.mulf %94, %117 : vector<10x32xf32>
    %cst_35 = arith.constant dense<0.000000e+00> : vector<10x10xf32>
    %119 = tpu.matmul %93, %118, %cst_35 {dimension_numbers = #tpu.dot_dimension_numbers<[1], [1], [0], [0], [0, 0, 1, 0], [], []>} : vector<10x32xf32>, vector<10x32xf32>, vector<10x10xf32> -> vector<10x10xf32>
    %cst_36 = arith.constant 0.353553385 : f32
    %120 = vector.broadcast %cst_36 : f32 to vector<10x10xf32>
    %121 = arith.mulf %119, %120 : vector<10x10xf32>
    %122 = arith.addf %121, %57 : vector<10x10xf32>
    %cst_37 = arith.constant dense<0xFF800000> : vector<10xf32>
    %123 = vector.multi_reduction <maximumf>, %122, %cst_37 [1] : vector<10x10xf32> to vector<10xf32>
    %124 = vector.shape_cast %123 : vector<10xf32> to vector<10x1xf32>
    %125 = vector.broadcast %124 : vector<10x1xf32> to vector<10x10xf32>
    %126 = arith.subf %122, %125 : vector<10x10xf32>
    %127 = math.exp %126 : vector<10x10xf32>
    %cst_38 = arith.constant dense<0.000000e+00> : vector<10xf32>
    %128 = vector.multi_reduction <add>, %127, %cst_38 [1] : vector<10x10xf32> to vector<10xf32>
    %129 = vector.shape_cast %128 : vector<10xf32> to vector<10x1xf32>
    %130 = tpu.reciprocal %129 {approx = true} : vector<10x1xf32> -> vector<10x1xf32>
    %cst_39 = arith.constant dense<0.000000e+00> : vector<10x32xf32>
    %131 = tpu.matmul %127, %95, %cst_39 {dimension_numbers = #tpu.dot_dimension_numbers<[1], [0], [0], [1], [0, 0, 1, 1], [], []>} : vector<10x10xf32>, vector<10x32xf32>, vector<10x32xf32> -> vector<10x32xf32>
    %132 = vector.broadcast %42 : vector<1x32xf32> to vector<10x32xf32>
    %133 = vector.broadcast %130 : vector<10x1xf32> to vector<10x32xf32>
    %134 = arith.mulf %132, %133 : vector<10x32xf32>
    %135 = arith.mulf %131, %134 : vector<10x32xf32>
    %136 = arith.addf %116, %135 : vector<10x32xf32>
    %137 = vector.broadcast %49 : vector<1x32xf32> to vector<10x32xf32>
    %138 = arith.mulf %94, %137 : vector<10x32xf32>
    %cst_40 = arith.constant dense<0.000000e+00> : vector<10x10xf32>
    %139 = tpu.matmul %93, %138, %cst_40 {dimension_numbers = #tpu.dot_dimension_numbers<[1], [1], [0], [0], [0, 0, 1, 0], [], []>} : vector<10x32xf32>, vector<10x32xf32>, vector<10x10xf32> -> vector<10x10xf32>
    %cst_41 = arith.constant 0.353553385 : f32
    %140 = vector.broadcast %cst_41 : f32 to vector<10x10xf32>
    %141 = arith.mulf %139, %140 : vector<10x10xf32>
    %142 = arith.addf %141, %57 : vector<10x10xf32>
    %cst_42 = arith.constant dense<0xFF800000> : vector<10xf32>
    %143 = vector.multi_reduction <maximumf>, %142, %cst_42 [1] : vector<10x10xf32> to vector<10xf32>
    %144 = vector.shape_cast %143 : vector<10xf32> to vector<10x1xf32>
    %145 = vector.broadcast %144 : vector<10x1xf32> to vector<10x10xf32>
    %146 = arith.subf %142, %145 : vector<10x10xf32>
    %147 = math.exp %146 : vector<10x10xf32>
    %cst_43 = arith.constant dense<0.000000e+00> : vector<10xf32>
    %148 = vector.multi_reduction <add>, %147, %cst_43 [1] : vector<10x10xf32> to vector<10xf32>
    %149 = vector.shape_cast %148 : vector<10xf32> to vector<10x1xf32>
    %150 = tpu.reciprocal %149 {approx = true} : vector<10x1xf32> -> vector<10x1xf32>
    %cst_44 = arith.constant dense<0.000000e+00> : vector<10x32xf32>
    %151 = tpu.matmul %147, %95, %cst_44 {dimension_numbers = #tpu.dot_dimension_numbers<[1], [0], [0], [1], [0, 0, 1, 1], [], []>} : vector<10x10xf32>, vector<10x32xf32>, vector<10x32xf32> -> vector<10x32xf32>
    %152 = vector.broadcast %49 : vector<1x32xf32> to vector<10x32xf32>
    %153 = vector.broadcast %150 : vector<10x1xf32> to vector<10x32xf32>
    %154 = arith.mulf %152, %153 : vector<10x32xf32>
    %155 = arith.mulf %151, %154 : vector<10x32xf32>
    %156 = arith.addf %136, %155 : vector<10x32xf32>
    %157 = vector.broadcast %56 : vector<1x32xf32> to vector<10x32xf32>
    %158 = arith.mulf %94, %157 : vector<10x32xf32>
    %cst_45 = arith.constant dense<0.000000e+00> : vector<10x10xf32>
    %159 = tpu.matmul %93, %158, %cst_45 {dimension_numbers = #tpu.dot_dimension_numbers<[1], [1], [0], [0], [0, 0, 1, 0], [], []>} : vector<10x32xf32>, vector<10x32xf32>, vector<10x10xf32> -> vector<10x10xf32>
    %cst_46 = arith.constant 0.353553385 : f32
    %160 = vector.broadcast %cst_46 : f32 to vector<10x10xf32>
    %161 = arith.mulf %159, %160 : vector<10x10xf32>
    %162 = arith.addf %161, %57 : vector<10x10xf32>
    %cst_47 = arith.constant dense<0xFF800000> : vector<10xf32>
    %163 = vector.multi_reduction <maximumf>, %162, %cst_47 [1] : vector<10x10xf32> to vector<10xf32>
    %164 = vector.shape_cast %163 : vector<10xf32> to vector<10x1xf32>
    %165 = vector.broadcast %164 : vector<10x1xf32> to vector<10x10xf32>
    %166 = arith.subf %162, %165 : vector<10x10xf32>
    %167 = math.exp %166 : vector<10x10xf32>
    %cst_48 = arith.constant dense<0.000000e+00> : vector<10xf32>
    %168 = vector.multi_reduction <add>, %167, %cst_48 [1] : vector<10x10xf32> to vector<10xf32>
    %169 = vector.shape_cast %168 : vector<10xf32> to vector<10x1xf32>
    %170 = tpu.reciprocal %169 {approx = true} : vector<10x1xf32> -> vector<10x1xf32>
    %cst_49 = arith.constant dense<0.000000e+00> : vector<10x32xf32>
    %171 = tpu.matmul %167, %95, %cst_49 {dimension_numbers = #tpu.dot_dimension_numbers<[1], [0], [0], [1], [0, 0, 1, 1], [], []>} : vector<10x10xf32>, vector<10x32xf32>, vector<10x32xf32> -> vector<10x32xf32>
    %172 = vector.broadcast %56 : vector<1x32xf32> to vector<10x32xf32>
    %173 = vector.broadcast %170 : vector<10x1xf32> to vector<10x32xf32>
    %174 = arith.mulf %172, %173 : vector<10x32xf32>
    %175 = arith.mulf %171, %174 : vector<10x32xf32>
    %176 = arith.addf %156, %175 : vector<10x32xf32>
    %c0_50 = arith.constant 0 : index
    %c0_51 = arith.constant 0 : index
    %c0_52 = arith.constant 0 : index
    %177 = vector.load %arg7[%c0_50, %c0_51, %c0_52] : memref<2x32x32xf32, #tpu.memory_space<vmem>>, vector<1x32x32xf32>
    %178 = vector.shape_cast %177 : vector<1x32x32xf32> to vector<32x32xf32>
    %cst_53 = arith.constant dense<0.000000e+00> : vector<10x32xf32>
    %179 = tpu.matmul %176, %178, %cst_53 {dimension_numbers = #tpu.dot_dimension_numbers<[1], [0], [0], [1], [0, 0, 1, 1], [], []>} : vector<10x32xf32>, vector<32x32xf32>, vector<10x32xf32> -> vector<10x32xf32>
    %180 = arith.addf %27, %179 : vector<10x32xf32>
    %181 = vector.broadcast %65 : vector<1x32xf32> to vector<10x32xf32>
    %182 = arith.addf %180, %181 : vector<10x32xf32>
    %cst_54 = arith.constant dense<0.000000e+00> : vector<10xf32>
    %183 = vector.multi_reduction <add>, %182, %cst_54 [1] : vector<10x32xf32> to vector<10xf32>
    %184 = vector.shape_cast %183 : vector<10xf32> to vector<10x1xf32>
    %cst_55 = arith.constant 3.200000e+01 : f32
    %185 = vector.broadcast %cst_55 : f32 to vector<10x1xf32>
    %186 = arith.divf %184, %185 : vector<10x1xf32>
    %187 = vector.broadcast %186 : vector<10x1xf32> to vector<10x32xf32>
    %188 = arith.subf %182, %187 : vector<10x32xf32>
    %189 = arith.mulf %188, %188 : vector<10x32xf32>
    %cst_56 = arith.constant dense<0.000000e+00> : vector<10xf32>
    %190 = vector.multi_reduction <add>, %189, %cst_56 [1] : vector<10x32xf32> to vector<10xf32>
    %191 = vector.shape_cast %190 : vector<10xf32> to vector<10x1xf32>
    %cst_57 = arith.constant 3.200000e+01 : f32
    %192 = vector.broadcast %cst_57 : f32 to vector<10x1xf32>
    %193 = arith.divf %191, %192 : vector<10x1xf32>
    %cst_58 = arith.constant 9.99999974E-6 : f32
    %194 = vector.broadcast %cst_58 : f32 to vector<10x1xf32>
    %195 = arith.addf %193, %194 : vector<10x1xf32>
    %196 = math.rsqrt %195 : vector<10x1xf32>
    %197 = vector.broadcast %196 : vector<10x1xf32> to vector<10x32xf32>
    %198 = arith.mulf %188, %197 : vector<10x32xf32>
    %199 = vector.broadcast %62 : vector<1x32xf32> to vector<10x32xf32>
    %200 = arith.mulf %198, %199 : vector<10x32xf32>
    %201 = vector.broadcast %63 : vector<1x32xf32> to vector<10x32xf32>
    %202 = arith.addf %200, %201 : vector<10x32xf32>
    %c0_59 = arith.constant 0 : index
    %c0_60 = arith.constant 0 : index
    %c0_61 = arith.constant 0 : index
    %203 = vector.load %arg8[%c0_59, %c0_60, %c0_61] : memref<2x32x128xf32, #tpu.memory_space<vmem>>, vector<1x32x128xf32>
    %204 = vector.shape_cast %203 : vector<1x32x128xf32> to vector<32x128xf32>
    %cst_62 = arith.constant dense<0.000000e+00> : vector<10x128xf32>
    %205 = tpu.matmul %202, %204, %cst_62 {dimension_numbers = #tpu.dot_dimension_numbers<[1], [0], [0], [1], [0, 0, 1, 1], [], []>} : vector<10x32xf32>, vector<32x128xf32>, vector<10x128xf32> -> vector<10x128xf32>
    %206 = vector.broadcast %66 : vector<1x128xf32> to vector<10x128xf32>
    %207 = arith.addf %205, %206 : vector<10x128xf32>
    %208 = arith.mulf %207, %207 : vector<10x128xf32>
    %209 = arith.mulf %207, %208 : vector<10x128xf32>
    %cst_63 = arith.constant 4.471500e-02 : f32
    %210 = vector.broadcast %cst_63 : f32 to vector<10x128xf32>
    %211 = arith.mulf %210, %209 : vector<10x128xf32>
    %212 = arith.addf %207, %211 : vector<10x128xf32>
    %cst_64 = arith.constant 0.797884583 : f32
    %213 = vector.broadcast %cst_64 : f32 to vector<10x128xf32>
    %214 = arith.mulf %213, %212 : vector<10x128xf32>
    %215 = math.tanh %214 : vector<10x128xf32>
    %cst_65 = arith.constant 1.000000e+00 : f32
    %216 = vector.broadcast %cst_65 : f32 to vector<10x128xf32>
    %217 = arith.addf %216, %215 : vector<10x128xf32>
    %cst_66 = arith.constant 5.000000e-01 : f32
    %218 = vector.broadcast %cst_66 : f32 to vector<10x128xf32>
    %219 = arith.mulf %218, %217 : vector<10x128xf32>
    %220 = arith.mulf %207, %219 : vector<10x128xf32>
    %c0_67 = arith.constant 0 : index
    %c0_68 = arith.constant 0 : index
    %c0_69 = arith.constant 0 : index
    %221 = vector.load %arg9[%c0_67, %c0_68, %c0_69] : memref<2x128x32xf32, #tpu.memory_space<vmem>>, vector<1x128x32xf32>
    %222 = vector.shape_cast %221 : vector<1x128x32xf32> to vector<128x32xf32>
    %cst_70 = arith.constant dense<0.000000e+00> : vector<10x32xf32>
    %223 = tpu.matmul %220, %222, %cst_70 {dimension_numbers = #tpu.dot_dimension_numbers<[1], [0], [0], [1], [0, 0, 1, 1], [], []>} : vector<10x128xf32>, vector<128x32xf32>, vector<10x32xf32> -> vector<10x32xf32>
    %224 = arith.addf %182, %223 : vector<10x32xf32>
    %225 = vector.broadcast %67 : vector<1x32xf32> to vector<10x32xf32>
    %226 = arith.addf %224, %225 : vector<10x32xf32>
    %c1 = arith.constant 1 : index
    %c0_71 = arith.constant 0 : index
    %c0_72 = arith.constant 0 : index
    %227 = vector.load %arg10[%c1, %c0_71, %c0_72] : memref<2x8x128xf32, #tpu.memory_space<vmem>>, vector<1x8x128xf32>
    %228 = vector.shape_cast %227 : vector<1x8x128xf32> to vector<8x128xf32>
    %229 = vector.extract_strided_slice %228 {offsets = [0, 0], sizes = [1, 32], strides = [1, 1]} : vector<8x128xf32> to vector<1x32xf32>
    %230 = vector.extract_strided_slice %228 {offsets = [1, 0], sizes = [1, 32], strides = [1, 1]} : vector<8x128xf32> to vector<1x32xf32>
    %231 = vector.extract_strided_slice %228 {offsets = [2, 0], sizes = [1, 32], strides = [1, 1]} : vector<8x128xf32> to vector<1x32xf32>
    %232 = vector.extract_strided_slice %228 {offsets = [3, 0], sizes = [1, 32], strides = [1, 1]} : vector<8x128xf32> to vector<1x32xf32>
    %233 = vector.extract_strided_slice %228 {offsets = [4, 0], sizes = [1, 96], strides = [1, 1]} : vector<8x128xf32> to vector<1x96xf32>
    %234 = vector.extract_strided_slice %228 {offsets = [5, 0], sizes = [1, 32], strides = [1, 1]} : vector<8x128xf32> to vector<1x32xf32>
    %235 = vector.extract_strided_slice %228 {offsets = [6, 0], sizes = [1, 128], strides = [1, 1]} : vector<8x128xf32> to vector<1x128xf32>
    %236 = vector.extract_strided_slice %228 {offsets = [7, 0], sizes = [1, 32], strides = [1, 1]} : vector<8x128xf32> to vector<1x32xf32>
    %cst_73 = arith.constant dense<0.000000e+00> : vector<10xf32>
    %237 = vector.multi_reduction <add>, %226, %cst_73 [1] : vector<10x32xf32> to vector<10xf32>
    %238 = vector.shape_cast %237 : vector<10xf32> to vector<10x1xf32>
    %cst_74 = arith.constant 3.200000e+01 : f32
    %239 = vector.broadcast %cst_74 : f32 to vector<10x1xf32>
    %240 = arith.divf %238, %239 : vector<10x1xf32>
    %241 = vector.broadcast %240 : vector<10x1xf32> to vector<10x32xf32>
    %242 = arith.subf %226, %241 : vector<10x32xf32>
    %243 = arith.mulf %242, %242 : vector<10x32xf32>
    %cst_75 = arith.constant dense<0.000000e+00> : vector<10xf32>
    %244 = vector.multi_reduction <add>, %243, %cst_75 [1] : vector<10x32xf32> to vector<10xf32>
    %245 = vector.shape_cast %244 : vector<10xf32> to vector<10x1xf32>
    %cst_76 = arith.constant 3.200000e+01 : f32
    %246 = vector.broadcast %cst_76 : f32 to vector<10x1xf32>
    %247 = arith.divf %245, %246 : vector<10x1xf32>
    %cst_77 = arith.constant 9.99999974E-6 : f32
    %248 = vector.broadcast %cst_77 : f32 to vector<10x1xf32>
    %249 = arith.addf %247, %248 : vector<10x1xf32>
    %250 = math.rsqrt %249 : vector<10x1xf32>
    %251 = vector.broadcast %250 : vector<10x1xf32> to vector<10x32xf32>
    %252 = arith.mulf %242, %251 : vector<10x32xf32>
    %253 = vector.broadcast %229 : vector<1x32xf32> to vector<10x32xf32>
    %254 = arith.mulf %252, %253 : vector<10x32xf32>
    %255 = vector.broadcast %230 : vector<1x32xf32> to vector<10x32xf32>
    %256 = arith.addf %254, %255 : vector<10x32xf32>
    %c1_78 = arith.constant 1 : index
    %c0_79 = arith.constant 0 : index
    %c0_80 = arith.constant 0 : index
    %257 = vector.load %arg6[%c1_78, %c0_79, %c0_80] : memref<2x32x96xf32, #tpu.memory_space<vmem>>, vector<1x32x96xf32>
    %258 = vector.shape_cast %257 : vector<1x32x96xf32> to vector<32x96xf32>
    %cst_81 = arith.constant dense<0.000000e+00> : vector<10x96xf32>
    %259 = tpu.matmul %256, %258, %cst_81 {dimension_numbers = #tpu.dot_dimension_numbers<[1], [0], [0], [1], [0, 0, 1, 1], [], []>} : vector<10x32xf32>, vector<32x96xf32>, vector<10x96xf32> -> vector<10x96xf32>
    %260 = vector.broadcast %233 : vector<1x96xf32> to vector<10x96xf32>
    %261 = arith.addf %259, %260 : vector<10x96xf32>
    %262 = vector.extract_strided_slice %261 {offsets = [0, 0], sizes = [10, 32], strides = [1, 1]} : vector<10x96xf32> to vector<10x32xf32>
    %263 = vector.extract_strided_slice %261 {offsets = [0, 32], sizes = [10, 32], strides = [1, 1]} : vector<10x96xf32> to vector<10x32xf32>
    %264 = vector.extract_strided_slice %261 {offsets = [0, 64], sizes = [10, 32], strides = [1, 1]} : vector<10x96xf32> to vector<10x32xf32>
    %cst_82 = arith.constant 0.000000e+00 : f32
    %265 = vector.broadcast %cst_82 : f32 to vector<10x32xf32>
    %266 = vector.broadcast %35 : vector<1x32xf32> to vector<10x32xf32>
    %267 = arith.mulf %263, %266 : vector<10x32xf32>
    %cst_83 = arith.constant dense<0.000000e+00> : vector<10x10xf32>
    %268 = tpu.matmul %262, %267, %cst_83 {dimension_numbers = #tpu.dot_dimension_numbers<[1], [1], [0], [0], [0, 0, 1, 0], [], []>} : vector<10x32xf32>, vector<10x32xf32>, vector<10x10xf32> -> vector<10x10xf32>
    %cst_84 = arith.constant 0.353553385 : f32
    %269 = vector.broadcast %cst_84 : f32 to vector<10x10xf32>
    %270 = arith.mulf %268, %269 : vector<10x10xf32>
    %271 = arith.addf %270, %57 : vector<10x10xf32>
    %cst_85 = arith.constant dense<0xFF800000> : vector<10xf32>
    %272 = vector.multi_reduction <maximumf>, %271, %cst_85 [1] : vector<10x10xf32> to vector<10xf32>
    %273 = vector.shape_cast %272 : vector<10xf32> to vector<10x1xf32>
    %274 = vector.broadcast %273 : vector<10x1xf32> to vector<10x10xf32>
    %275 = arith.subf %271, %274 : vector<10x10xf32>
    %276 = math.exp %275 : vector<10x10xf32>
    %cst_86 = arith.constant dense<0.000000e+00> : vector<10xf32>
    %277 = vector.multi_reduction <add>, %276, %cst_86 [1] : vector<10x10xf32> to vector<10xf32>
    %278 = vector.shape_cast %277 : vector<10xf32> to vector<10x1xf32>
    %279 = tpu.reciprocal %278 {approx = true} : vector<10x1xf32> -> vector<10x1xf32>
    %cst_87 = arith.constant dense<0.000000e+00> : vector<10x32xf32>
    %280 = tpu.matmul %276, %264, %cst_87 {dimension_numbers = #tpu.dot_dimension_numbers<[1], [0], [0], [1], [0, 0, 1, 1], [], []>} : vector<10x10xf32>, vector<10x32xf32>, vector<10x32xf32> -> vector<10x32xf32>
    %281 = vector.broadcast %35 : vector<1x32xf32> to vector<10x32xf32>
    %282 = vector.broadcast %279 : vector<10x1xf32> to vector<10x32xf32>
    %283 = arith.mulf %281, %282 : vector<10x32xf32>
    %284 = arith.mulf %280, %283 : vector<10x32xf32>
    %285 = arith.addf %265, %284 : vector<10x32xf32>
    %286 = vector.broadcast %42 : vector<1x32xf32> to vector<10x32xf32>
    %287 = arith.mulf %263, %286 : vector<10x32xf32>
    %cst_88 = arith.constant dense<0.000000e+00> : vector<10x10xf32>
    %288 = tpu.matmul %262, %287, %cst_88 {dimension_numbers = #tpu.dot_dimension_numbers<[1], [1], [0], [0], [0, 0, 1, 0], [], []>} : vector<10x32xf32>, vector<10x32xf32>, vector<10x10xf32> -> vector<10x10xf32>
    %cst_89 = arith.constant 0.353553385 : f32
    %289 = vector.broadcast %cst_89 : f32 to vector<10x10xf32>
    %290 = arith.mulf %288, %289 : vector<10x10xf32>
    %291 = arith.addf %290, %57 : vector<10x10xf32>
    %cst_90 = arith.constant dense<0xFF800000> : vector<10xf32>
    %292 = vector.multi_reduction <maximumf>, %291, %cst_90 [1] : vector<10x10xf32> to vector<10xf32>
    %293 = vector.shape_cast %292 : vector<10xf32> to vector<10x1xf32>
    %294 = vector.broadcast %293 : vector<10x1xf32> to vector<10x10xf32>
    %295 = arith.subf %291, %294 : vector<10x10xf32>
    %296 = math.exp %295 : vector<10x10xf32>
    %cst_91 = arith.constant dense<0.000000e+00> : vector<10xf32>
    %297 = vector.multi_reduction <add>, %296, %cst_91 [1] : vector<10x10xf32> to vector<10xf32>
    %298 = vector.shape_cast %297 : vector<10xf32> to vector<10x1xf32>
    %299 = tpu.reciprocal %298 {approx = true} : vector<10x1xf32> -> vector<10x1xf32>
    %cst_92 = arith.constant dense<0.000000e+00> : vector<10x32xf32>
    %300 = tpu.matmul %296, %264, %cst_92 {dimension_numbers = #tpu.dot_dimension_numbers<[1], [0], [0], [1], [0, 0, 1, 1], [], []>} : vector<10x10xf32>, vector<10x32xf32>, vector<10x32xf32> -> vector<10x32xf32>
    %301 = vector.broadcast %42 : vector<1x32xf32> to vector<10x32xf32>
    %302 = vector.broadcast %299 : vector<10x1xf32> to vector<10x32xf32>
    %303 = arith.mulf %301, %302 : vector<10x32xf32>
    %304 = arith.mulf %300, %303 : vector<10x32xf32>
    %305 = arith.addf %285, %304 : vector<10x32xf32>
    %306 = vector.broadcast %49 : vector<1x32xf32> to vector<10x32xf32>
    %307 = arith.mulf %263, %306 : vector<10x32xf32>
    %cst_93 = arith.constant dense<0.000000e+00> : vector<10x10xf32>
    %308 = tpu.matmul %262, %307, %cst_93 {dimension_numbers = #tpu.dot_dimension_numbers<[1], [1], [0], [0], [0, 0, 1, 0], [], []>} : vector<10x32xf32>, vector<10x32xf32>, vector<10x10xf32> -> vector<10x10xf32>
    %cst_94 = arith.constant 0.353553385 : f32
    %309 = vector.broadcast %cst_94 : f32 to vector<10x10xf32>
    %310 = arith.mulf %308, %309 : vector<10x10xf32>
    %311 = arith.addf %310, %57 : vector<10x10xf32>
    %cst_95 = arith.constant dense<0xFF800000> : vector<10xf32>
    %312 = vector.multi_reduction <maximumf>, %311, %cst_95 [1] : vector<10x10xf32> to vector<10xf32>
    %313 = vector.shape_cast %312 : vector<10xf32> to vector<10x1xf32>
    %314 = vector.broadcast %313 : vector<10x1xf32> to vector<10x10xf32>
    %315 = arith.subf %311, %314 : vector<10x10xf32>
    %316 = math.exp %315 : vector<10x10xf32>
    %cst_96 = arith.constant dense<0.000000e+00> : vector<10xf32>
    %317 = vector.multi_reduction <add>, %316, %cst_96 [1] : vector<10x10xf32> to vector<10xf32>
    %318 = vector.shape_cast %317 : vector<10xf32> to vector<10x1xf32>
    %319 = tpu.reciprocal %318 {approx = true} : vector<10x1xf32> -> vector<10x1xf32>
    %cst_97 = arith.constant dense<0.000000e+00> : vector<10x32xf32>
    %320 = tpu.matmul %316, %264, %cst_97 {dimension_numbers = #tpu.dot_dimension_numbers<[1], [0], [0], [1], [0, 0, 1, 1], [], []>} : vector<10x10xf32>, vector<10x32xf32>, vector<10x32xf32> -> vector<10x32xf32>
    %321 = vector.broadcast %49 : vector<1x32xf32> to vector<10x32xf32>
    %322 = vector.broadcast %319 : vector<10x1xf32> to vector<10x32xf32>
    %323 = arith.mulf %321, %322 : vector<10x32xf32>
    %324 = arith.mulf %320, %323 : vector<10x32xf32>
    %325 = arith.addf %305, %324 : vector<10x32xf32>
    %326 = vector.broadcast %56 : vector<1x32xf32> to vector<10x32xf32>
    %327 = arith.mulf %263, %326 : vector<10x32xf32>
    %cst_98 = arith.constant dense<0.000000e+00> : vector<10x10xf32>
    %328 = tpu.matmul %262, %327, %cst_98 {dimension_numbers = #tpu.dot_dimension_numbers<[1], [1], [0], [0], [0, 0, 1, 0], [], []>} : vector<10x32xf32>, vector<10x32xf32>, vector<10x10xf32> -> vector<10x10xf32>
    %cst_99 = arith.constant 0.353553385 : f32
    %329 = vector.broadcast %cst_99 : f32 to vector<10x10xf32>
    %330 = arith.mulf %328, %329 : vector<10x10xf32>
    %331 = arith.addf %330, %57 : vector<10x10xf32>
    %cst_100 = arith.constant dense<0xFF800000> : vector<10xf32>
    %332 = vector.multi_reduction <maximumf>, %331, %cst_100 [1] : vector<10x10xf32> to vector<10xf32>
    %333 = vector.shape_cast %332 : vector<10xf32> to vector<10x1xf32>
    %334 = vector.broadcast %333 : vector<10x1xf32> to vector<10x10xf32>
    %335 = arith.subf %331, %334 : vector<10x10xf32>
    %336 = math.exp %335 : vector<10x10xf32>
    %cst_101 = arith.constant dense<0.000000e+00> : vector<10xf32>
    %337 = vector.multi_reduction <add>, %336, %cst_101 [1] : vector<10x10xf32> to vector<10xf32>
    %338 = vector.shape_cast %337 : vector<10xf32> to vector<10x1xf32>
    %339 = tpu.reciprocal %338 {approx = true} : vector<10x1xf32> -> vector<10x1xf32>
    %cst_102 = arith.constant dense<0.000000e+00> : vector<10x32xf32>
    %340 = tpu.matmul %336, %264, %cst_102 {dimension_numbers = #tpu.dot_dimension_numbers<[1], [0], [0], [1], [0, 0, 1, 1], [], []>} : vector<10x10xf32>, vector<10x32xf32>, vector<10x32xf32> -> vector<10x32xf32>
    %341 = vector.broadcast %56 : vector<1x32xf32> to vector<10x32xf32>
    %342 = vector.broadcast %339 : vector<10x1xf32> to vector<10x32xf32>
    %343 = arith.mulf %341, %342 : vector<10x32xf32>
    %344 = arith.mulf %340, %343 : vector<10x32xf32>
    %345 = arith.addf %325, %344 : vector<10x32xf32>
    %c1_103 = arith.constant 1 : index
    %c0_104 = arith.constant 0 : index
    %c0_105 = arith.constant 0 : index
    %346 = vector.load %arg7[%c1_103, %c0_104, %c0_105] : memref<2x32x32xf32, #tpu.memory_space<vmem>>, vector<1x32x32xf32>
    %347 = vector.shape_cast %346 : vector<1x32x32xf32> to vector<32x32xf32>
    %cst_106 = arith.constant dense<0.000000e+00> : vector<10x32xf32>
    %348 = tpu.matmul %345, %347, %cst_106 {dimension_numbers = #tpu.dot_dimension_numbers<[1], [0], [0], [1], [0, 0, 1, 1], [], []>} : vector<10x32xf32>, vector<32x32xf32>, vector<10x32xf32> -> vector<10x32xf32>
    %349 = arith.addf %226, %348 : vector<10x32xf32>
    %350 = vector.broadcast %234 : vector<1x32xf32> to vector<10x32xf32>
    %351 = arith.addf %349, %350 : vector<10x32xf32>
    %cst_107 = arith.constant dense<0.000000e+00> : vector<10xf32>
    %352 = vector.multi_reduction <add>, %351, %cst_107 [1] : vector<10x32xf32> to vector<10xf32>
    %353 = vector.shape_cast %352 : vector<10xf32> to vector<10x1xf32>
    %cst_108 = arith.constant 3.200000e+01 : f32
    %354 = vector.broadcast %cst_108 : f32 to vector<10x1xf32>
    %355 = arith.divf %353, %354 : vector<10x1xf32>
    %356 = vector.broadcast %355 : vector<10x1xf32> to vector<10x32xf32>
    %357 = arith.subf %351, %356 : vector<10x32xf32>
    %358 = arith.mulf %357, %357 : vector<10x32xf32>
    %cst_109 = arith.constant dense<0.000000e+00> : vector<10xf32>
    %359 = vector.multi_reduction <add>, %358, %cst_109 [1] : vector<10x32xf32> to vector<10xf32>
    %360 = vector.shape_cast %359 : vector<10xf32> to vector<10x1xf32>
    %cst_110 = arith.constant 3.200000e+01 : f32
    %361 = vector.broadcast %cst_110 : f32 to vector<10x1xf32>
    %362 = arith.divf %360, %361 : vector<10x1xf32>
    %cst_111 = arith.constant 9.99999974E-6 : f32
    %363 = vector.broadcast %cst_111 : f32 to vector<10x1xf32>
    %364 = arith.addf %362, %363 : vector<10x1xf32>
    %365 = math.rsqrt %364 : vector<10x1xf32>
    %366 = vector.broadcast %365 : vector<10x1xf32> to vector<10x32xf32>
    %367 = arith.mulf %357, %366 : vector<10x32xf32>
    %368 = vector.broadcast %231 : vector<1x32xf32> to vector<10x32xf32>
    %369 = arith.mulf %367, %368 : vector<10x32xf32>
    %370 = vector.broadcast %232 : vector<1x32xf32> to vector<10x32xf32>
    %371 = arith.addf %369, %370 : vector<10x32xf32>
    %c1_112 = arith.constant 1 : index
    %c0_113 = arith.constant 0 : index
    %c0_114 = arith.constant 0 : index
    %372 = vector.load %arg8[%c1_112, %c0_113, %c0_114] : memref<2x32x128xf32, #tpu.memory_space<vmem>>, vector<1x32x128xf32>
    %373 = vector.shape_cast %372 : vector<1x32x128xf32> to vector<32x128xf32>
    %cst_115 = arith.constant dense<0.000000e+00> : vector<10x128xf32>
    %374 = tpu.matmul %371, %373, %cst_115 {dimension_numbers = #tpu.dot_dimension_numbers<[1], [0], [0], [1], [0, 0, 1, 1], [], []>} : vector<10x32xf32>, vector<32x128xf32>, vector<10x128xf32> -> vector<10x128xf32>
    %375 = vector.broadcast %235 : vector<1x128xf32> to vector<10x128xf32>
    %376 = arith.addf %374, %375 : vector<10x128xf32>
    %377 = arith.mulf %376, %376 : vector<10x128xf32>
    %378 = arith.mulf %376, %377 : vector<10x128xf32>
    %cst_116 = arith.constant 4.471500e-02 : f32
    %379 = vector.broadcast %cst_116 : f32 to vector<10x128xf32>
    %380 = arith.mulf %379, %378 : vector<10x128xf32>
    %381 = arith.addf %376, %380 : vector<10x128xf32>
    %cst_117 = arith.constant 0.797884583 : f32
    %382 = vector.broadcast %cst_117 : f32 to vector<10x128xf32>
    %383 = arith.mulf %382, %381 : vector<10x128xf32>
    %384 = math.tanh %383 : vector<10x128xf32>
    %cst_118 = arith.constant 1.000000e+00 : f32
    %385 = vector.broadcast %cst_118 : f32 to vector<10x128xf32>
    %386 = arith.addf %385, %384 : vector<10x128xf32>
    %cst_119 = arith.constant 5.000000e-01 : f32
    %387 = vector.broadcast %cst_119 : f32 to vector<10x128xf32>
    %388 = arith.mulf %387, %386 : vector<10x128xf32>
    %389 = arith.mulf %376, %388 : vector<10x128xf32>
    %c1_120 = arith.constant 1 : index
    %c0_121 = arith.constant 0 : index
    %c0_122 = arith.constant 0 : index
    %390 = vector.load %arg9[%c1_120, %c0_121, %c0_122] : memref<2x128x32xf32, #tpu.memory_space<vmem>>, vector<1x128x32xf32>
    %391 = vector.shape_cast %390 : vector<1x128x32xf32> to vector<128x32xf32>
    %cst_123 = arith.constant dense<0.000000e+00> : vector<10x32xf32>
    %392 = tpu.matmul %389, %391, %cst_123 {dimension_numbers = #tpu.dot_dimension_numbers<[1], [0], [0], [1], [0, 0, 1, 1], [], []>} : vector<10x128xf32>, vector<128x32xf32>, vector<10x32xf32> -> vector<10x32xf32>
    %393 = arith.addf %351, %392 : vector<10x32xf32>
    %394 = vector.broadcast %236 : vector<1x32xf32> to vector<10x32xf32>
    %395 = arith.addf %393, %394 : vector<10x32xf32>
    %396 = vector.extract_strided_slice %5 {offsets = [2, 0], sizes = [1, 32], strides = [1, 1]} : vector<4x32xf32> to vector<1x32xf32>
    %397 = vector.extract_strided_slice %5 {offsets = [3, 0], sizes = [1, 32], strides = [1, 1]} : vector<4x32xf32> to vector<1x32xf32>
    %cst_124 = arith.constant dense<0.000000e+00> : vector<10xf32>
    %398 = vector.multi_reduction <add>, %395, %cst_124 [1] : vector<10x32xf32> to vector<10xf32>
    %399 = vector.shape_cast %398 : vector<10xf32> to vector<10x1xf32>
    %cst_125 = arith.constant 3.200000e+01 : f32
    %400 = vector.broadcast %cst_125 : f32 to vector<10x1xf32>
    %401 = arith.divf %399, %400 : vector<10x1xf32>
    %402 = vector.broadcast %401 : vector<10x1xf32> to vector<10x32xf32>
    %403 = arith.subf %395, %402 : vector<10x32xf32>
    %404 = arith.mulf %403, %403 : vector<10x32xf32>
    %cst_126 = arith.constant dense<0.000000e+00> : vector<10xf32>
    %405 = vector.multi_reduction <add>, %404, %cst_126 [1] : vector<10x32xf32> to vector<10xf32>
    %406 = vector.shape_cast %405 : vector<10xf32> to vector<10x1xf32>
    %cst_127 = arith.constant 3.200000e+01 : f32
    %407 = vector.broadcast %cst_127 : f32 to vector<10x1xf32>
    %408 = arith.divf %406, %407 : vector<10x1xf32>
    %cst_128 = arith.constant 9.99999974E-6 : f32
    %409 = vector.broadcast %cst_128 : f32 to vector<10x1xf32>
    %410 = arith.addf %408, %409 : vector<10x1xf32>
    %411 = math.rsqrt %410 : vector<10x1xf32>
    %412 = vector.broadcast %411 : vector<10x1xf32> to vector<10x32xf32>
    %413 = arith.mulf %403, %412 : vector<10x32xf32>
    %414 = vector.broadcast %396 : vector<1x32xf32> to vector<10x32xf32>
    %415 = arith.mulf %413, %414 : vector<10x32xf32>
    %416 = vector.broadcast %397 : vector<1x32xf32> to vector<10x32xf32>
    %417 = arith.addf %415, %416 : vector<10x32xf32>
    %418 = vector.extract_strided_slice %417 {offsets = [0, 0], sizes = [2, 32], strides = [1, 1]} : vector<10x32xf32> to vector<2x32xf32>
    %c0_129 = arith.constant 0 : index
    %c0_130 = arith.constant 0 : index
    %419 = vector.load %arg11[%c0_129, %c0_130] : memref<32x32xf32, #tpu.memory_space<vmem>>, vector<32x32xf32>
    %cst_131 = arith.constant dense<0.000000e+00> : vector<2x32xf32>
    %420 = tpu.matmul %418, %419, %cst_131 {dimension_numbers = #tpu.dot_dimension_numbers<[1], [0], [0], [1], [0, 0, 1, 1], [], []>} : vector<2x32xf32>, vector<32x32xf32>, vector<2x32xf32> -> vector<2x32xf32>
    %c0_132 = arith.constant 0 : index
    %c0_133 = arith.constant 0 : index
    %421 = vector.load %arg15[%c0_132, %c0_133] : memref<5x128xf32, #tpu.memory_space<vmem>>, vector<5x128xf32>
    %422 = arith.mulf %420, %420 : vector<2x32xf32>
    %cst_134 = arith.constant dense<0.000000e+00> : vector<2xf32>
    %423 = vector.multi_reduction <add>, %422, %cst_134 [1] : vector<2x32xf32> to vector<2xf32>
    %424 = vector.shape_cast %423 : vector<2xf32> to vector<2x1xf32>
    %cst_135 = arith.constant 1.000000e-24 : f32
    %425 = vector.broadcast %cst_135 : f32 to vector<2x1xf32>
    %426 = arith.maximumf %424, %425 : vector<2x1xf32>
    %427 = math.rsqrt %426 : vector<2x1xf32>
    %428 = vector.broadcast %427 : vector<2x1xf32> to vector<2x32xf32>
    %429 = arith.mulf %420, %428 : vector<2x32xf32>
    %c0_136 = arith.constant 0 : index
    %c0_137 = arith.constant 0 : index
    %430 = vector.load %arg12[%c0_136, %c0_137] : memref<32x64xf32, #tpu.memory_space<vmem>>, vector<32x64xf32>
    %cst_138 = arith.constant dense<0.000000e+00> : vector<2x64xf32>
    %431 = tpu.matmul %429, %430, %cst_138 {dimension_numbers = #tpu.dot_dimension_numbers<[1], [0], [0], [1], [0, 0, 1, 1], [], []>} : vector<2x32xf32>, vector<32x64xf32>, vector<2x64xf32> -> vector<2x64xf32>
    %432 = vector.extract_strided_slice %421 {offsets = [0, 0], sizes = [1, 64], strides = [1, 1]} : vector<5x128xf32> to vector<1x64xf32>
    %433 = vector.broadcast %432 : vector<1x64xf32> to vector<2x64xf32>
    %434 = arith.mulf %431, %433 : vector<2x64xf32>
    %435 = vector.extract_strided_slice %421 {offsets = [1, 0], sizes = [1, 64], strides = [1, 1]} : vector<5x128xf32> to vector<1x64xf32>
    %436 = vector.broadcast %435 : vector<1x64xf32> to vector<2x64xf32>
    %437 = arith.addf %434, %436 : vector<2x64xf32>
    %cst_139 = arith.constant 0.000000e+00 : f32
    %438 = vector.broadcast %cst_139 : f32 to vector<2x64xf32>
    %439 = arith.maximumf %437, %438 : vector<2x64xf32>
    %c0_140 = arith.constant 0 : index
    %c0_141 = arith.constant 0 : index
    %440 = vector.load %arg13[%c0_140, %c0_141] : memref<64x32xf32, #tpu.memory_space<vmem>>, vector<64x32xf32>
    %cst_142 = arith.constant dense<0.000000e+00> : vector<2x32xf32>
    %441 = tpu.matmul %439, %440, %cst_142 {dimension_numbers = #tpu.dot_dimension_numbers<[1], [0], [0], [1], [0, 0, 1, 1], [], []>} : vector<2x64xf32>, vector<64x32xf32>, vector<2x32xf32> -> vector<2x32xf32>
    %442 = vector.extract_strided_slice %421 {offsets = [2, 0], sizes = [1, 32], strides = [1, 1]} : vector<5x128xf32> to vector<1x32xf32>
    %443 = vector.broadcast %442 : vector<1x32xf32> to vector<2x32xf32>
    %444 = arith.mulf %441, %443 : vector<2x32xf32>
    %445 = vector.extract_strided_slice %421 {offsets = [3, 0], sizes = [1, 32], strides = [1, 1]} : vector<5x128xf32> to vector<1x32xf32>
    %446 = vector.broadcast %445 : vector<1x32xf32> to vector<2x32xf32>
    %447 = arith.addf %444, %446 : vector<2x32xf32>
    %cst_143 = arith.constant 0.000000e+00 : f32
    %448 = vector.broadcast %cst_143 : f32 to vector<2x32xf32>
    %449 = arith.maximumf %447, %448 : vector<2x32xf32>
    %c0_144 = arith.constant 0 : index
    %c0_145 = arith.constant 0 : index
    %450 = vector.load %arg14[%c0_144, %c0_145] : memref<32x128xf32, #tpu.memory_space<vmem>>, vector<32x128xf32>
    %cst_146 = arith.constant dense<0.000000e+00> : vector<2x128xf32>
    %451 = tpu.matmul %449, %450, %cst_146 {dimension_numbers = #tpu.dot_dimension_numbers<[1], [0], [0], [1], [0, 0, 1, 1], [], []>} : vector<2x32xf32>, vector<32x128xf32>, vector<2x128xf32> -> vector<2x128xf32>
    %452 = vector.extract_strided_slice %421 {offsets = [4, 0], sizes = [1, 128], strides = [1, 1]} : vector<5x128xf32> to vector<1x128xf32>
    %453 = vector.broadcast %452 : vector<1x128xf32> to vector<2x128xf32>
    %454 = arith.addf %451, %453 : vector<2x128xf32>
    %c0_147 = arith.constant 0 : index
    %c0_148 = arith.constant 0 : index
    %455 = vector.load %arg16[%c0_147, %c0_148] : memref<2x128xf32, #tpu.memory_space<vmem>>, vector<2x128xf32>
    tpu.vector_store %arg16[%c0_147, %c0_148], %454 {strides = array<i32>} : memref<2x128xf32, #tpu.memory_space<vmem>>, vector<2x128xf32>,
    return
  }
  func.func @transform_0(%arg0: i32) -> (i32, i32) {
    %c0_i32 = arith.constant 0 : i32
    %c0_i32_0 = arith.constant 0 : i32
    %c0_i32_1 = arith.constant 0 : i32
    return %c0_i32, %c0_i32_0 : i32, i32
  }
  func.func @transform_1(%arg0: i32) -> (i32, i32) {
    %c0_i32 = arith.constant 0 : i32
    %c0_i32_0 = arith.constant 0 : i32
    %c0_i32_1 = arith.constant 0 : i32
    return %c0_i32, %c0_i32_0 : i32, i32
  }
  func.func @transform_2(%arg0: i32) -> (i32, i32) {
    %c0_i32 = arith.constant 0 : i32
    %c0_i32_0 = arith.constant 0 : i32
    %c0_i32_1 = arith.constant 0 : i32
    return %c0_i32, %c0_i32_0 : i32, i32
  }
  func.func @transform_3(%arg0: i32) -> (i32, i32) {
    %c0_i32 = arith.constant 0 : i32
    %c0_i32_0 = arith.constant 0 : i32
    %c0_i32_1 = arith.constant 0 : i32
    return %c0_i32, %c0_i32_0 : i32, i32
  }
  func.func @transform_4(%arg0: i32) -> (i32, i32) {
    %c0_i32 = arith.constant 0 : i32
    %c0_i32_0 = arith.constant 0 : i32
    %c0_i32_1 = arith.constant 0 : i32
    return %c0_i32, %c0_i32_0 : i32, i32
  }
  func.func @transform_5(%arg0: i32) -> (i32, i32, i32) {
    %c0_i32 = arith.constant 0 : i32
    %c0_i32_0 = arith.constant 0 : i32
    %c0_i32_1 = arith.constant 0 : i32
    %c0_i32_2 = arith.constant 0 : i32
    return %c0_i32, %c0_i32_0, %c0_i32_1 : i32, i32, i32
  }
  func.func @transform_6(%arg0: i32) -> (i32, i32, i32) {
    %c0_i32 = arith.constant 0 : i32
    %c0_i32_0 = arith.constant 0 : i32
    %c0_i32_1 = arith.constant 0 : i32
    %c0_i32_2 = arith.constant 0 : i32
    return %c0_i32, %c0_i32_0, %c0_i32_1 : i32, i32, i32
  }
  func.func @transform_7(%arg0: i32) -> (i32, i32, i32) {
    %c0_i32 = arith.constant 0 : i32
    %c0_i32_0 = arith.constant 0 : i32
    %c0_i32_1 = arith.constant 0 : i32
    %c0_i32_2 = arith.constant 0 : i32
    return %c0_i32, %c0_i32_0, %c0_i32_1 : i32, i32, i32
  }
  func.func @transform_8(%arg0: i32) -> (i32, i32, i32) {
    %c0_i32 = arith.constant 0 : i32
    %c0_i32_0 = arith.constant 0 : i32
    %c0_i32_1 = arith.constant 0 : i32
    %c0_i32_2 = arith.constant 0 : i32
    return %c0_i32, %c0_i32_0, %c0_i32_1 : i32, i32, i32
  }
  func.func @transform_9(%arg0: i32) -> (i32, i32, i32) {
    %c0_i32 = arith.constant 0 : i32
    %c0_i32_0 = arith.constant 0 : i32
    %c0_i32_1 = arith.constant 0 : i32
    %c0_i32_2 = arith.constant 0 : i32
    return %c0_i32, %c0_i32_0, %c0_i32_1 : i32, i32, i32
  }
  func.func @transform_10(%arg0: i32) -> (i32, i32) {
    %c0_i32 = arith.constant 0 : i32
    %c0_i32_0 = arith.constant 0 : i32
    %c0_i32_1 = arith.constant 0 : i32
    return %c0_i32, %c0_i32_0 : i32, i32
  }
  func.func @transform_11(%arg0: i32) -> (i32, i32) {
    %c0_i32 = arith.constant 0 : i32
    %c0_i32_0 = arith.constant 0 : i32
    %c0_i32_1 = arith.constant 0 : i32
    return %c0_i32, %c0_i32_0 : i32, i32
  }
  func.func @transform_12(%arg0: i32) -> (i32, i32) {
    %c0_i32 = arith.constant 0 : i32
    %c0_i32_0 = arith.constant 0 : i32
    %c0_i32_1 = arith.constant 0 : i32
    return %c0_i32, %c0_i32_0 : i32, i32
  }
  func.func @transform_13(%arg0: i32) -> (i32, i32) {
    %c0_i32 = arith.constant 0 : i32
    %c0_i32_0 = arith.constant 0 : i32
    %c0_i32_1 = arith.constant 0 : i32
    return %c0_i32, %c0_i32_0 : i32, i32
  }
  func.func @transform_14(%arg0: i32) -> (i32, i32) {
    %c0_i32 = arith.constant 0 : i32
    %c0_i32_0 = arith.constant 0 : i32
    %c0_i32_1 = arith.constant 0 : i32
    return %c0_i32, %c0_i32_0 : i32, i32
  }
  func.func @transform_15(%arg0: i32) -> (i32, i32) {
    %c0_i32 = arith.constant 0 : i32
    %c0_i32_0 = arith.constant 0 : i32
    %c0_i32_1 = arith.constant 0 : i32
    return %c0_i32, %c0_i32_0 : i32, i32
  }
}

</mosaic_0001>

<bundles_post_ra>
// kernel: classifying_model.1
= control target key start
LH: loop header
LB: loop body
LE: loop exit
PB: predicated region body
PF: predicated region fallthrough
CT: control target
= control target key end

     0   :  { %v4196_v3 = vmov 0.0|0.0   ;;  %vm81_vm0 = vcmask 523264   ;;  %s5160_s0 = inlined_call_operand.vmem [shape: f32[10,192], index: 0, kind: input, shape index: {}]   ;;  %s5161_s1 = inlined_call_operand.vmem [shape: f32[192,32], index: 1, kind: input, shape index: {}]   ;;  %s5162_s2 = inlined_call_operand.vmem [shape: f32[10,32], index: 2, kind: input, shape index: {}]   ;;  %s5163_s3 = inlined_call_operand.vmem [shape: f32[10,10], index: 3, kind: input, shape index: {}]   ;;  %s5164_s4 = inlined_call_operand.vmem [shape: f32[4,32], index: 4, kind: input, shape index: {}]   ;;  %s5165_s5 = inlined_call_operand.vmem [shape: f32[2,32,96], index: 5, kind: input, shape index: {}]   ;;  %s5166_s6 = inlined_call_operand.vmem [shape: f32[2,32,32], index: 6, kind: input, shape index: {}]   ;;  %s5167_s7 = inlined_call_operand.vmem [shape: f32[2,32,128], index: 7, kind: input, shape index: {}]   ;;  %s5168_s8 = inlined_call_operand.vmem [shape: f32[2,128,32], index: 8, kind: input, shape index: {}]   ;;  %s5169_s9 = inlined_call_operand.vmem [shape: f32[2,8,128], index: 9, kind: input, shape index: {}]   ;;  %s5170_s10 = inlined_call_operand.vmem [shape: f32[32,32], index: 10, kind: input, shape index: {}]   ;;  %s5171_s11 = inlined_call_operand.vmem [shape: f32[32,64], index: 11, kind: input, shape index: {}]   ;;  %s5172_s12 = inlined_call_operand.vmem [shape: f32[64,32], index: 12, kind: input, shape index: {}]   ;;  %s5173_s13 = inlined_call_operand.vmem [shape: f32[32,128], index: 13, kind: input, shape index: {}]   ;;  %s5174_s14 = inlined_call_operand.vmem [shape: f32[5,128], index: 14, kind: input, shape index: {}]   ;;  %s5175_s15 = inlined_call_operand.hbm [shape: f32[2,128], index: 15, kind: output, shape index: {}]  }
   0x1   :  { %v55_v0 = vld [vmem:[%s5161_s1] sm:$0xff]  ;;  %v56_v1 = vld [vmem:[%s5161_s1 + $0x8] sm:$0xff]  ;;  %v57_v2 = vld [vmem:[%s5161_s1 + $0x10] sm:$0xff]  ;;  %3741 = vmatprep.subr.bf16.mxu0 %v4196_v3 }
   0x2   :  { %v3742_v4 = vpack.c.bf16 %v56_v1, %v55_v0  ;;  %v58_v5 = vld [vmem:[%s5161_s1 + $0x18] sm:$0xff]  ;;  %v59_v7 = vld [vmem:[%s5161_s1 + $0x20] sm:$0xff]  ;;  %v60_v8 = vld [vmem:[%s5161_s1 + $0x28] sm:$0xff] }
   0x3   :  { %v3745_v6 = vpack.c.bf16 %v58_v5, %v57_v2  ;;  %v3748_v9 = vpack.c.bf16 %v60_v8, %v59_v7  ;;  %v61_v10 = vld [vmem:[%s5161_s1 + $0x30] sm:$0xff]  ;;  %v62_v11 = vld [vmem:[%s5161_s1 + $0x38] sm:$0xff]  ;;  %v52_v12 = vld [vmem:[%s5160_s0 + $0x8] sm:$0xff] }
   0x4   :  { %3743 = vmatpush1.bf16.msra.mxu0 %v3742_v4  ;;  %3174 = vmatprep.mubr.msk.f32.mxu0 %vm81_vm0, %v52_v12 }
   0x5   :  { %3744 = vmatprep.subr.bf16.mxu0 %v4196_v3 }
   0x8   :  { %3746 = vmatpush1.bf16.msra.mxu0 %v3745_v6 }
   0x9   :  { %3747 = vmatprep.subr.bf16.mxu0 %v4196_v3 }
   0xa   :  { %20 = vsyncpa [#allocation3], 0  ;;  %v3751_v13 = vpack.c.bf16 %v62_v11, %v61_v10  ;;  %v63_v14 = vld [vmem:[%s5161_s1 + $0x40] sm:$0xff]  ;;  %v64_v15 = vld [vmem:[%s5161_s1 + $0x48] sm:$0xff]  ;;  %vm164_vm1 = vcmask 261120   ;;  %vm168_vm2 = vcmask 254976   ;;  %v193_v63 = vlaneseq }
   0xb   :  { %v3754_v16 = vpack.c.bf16 %v64_v15, %v63_v14  ;;  %v65_v17 = vld [vmem:[%s5161_s1 + $0x50] sm:$0xff]  ;;  %v66_v18 = vld [vmem:[%s5161_s1 + $0x58] sm:$0xff]  ;;  %v67_v20 = vld [vmem:[%s5161_s1 + $0x60] sm:$0xff]  ;;  %s4198_s25 = smov 32   ;;  %s4199_s28 = smov 96   ;;  %vm462_vm8 = vcmask 74752  }
   0xc   :  { %3749 = vmatpush1.bf16.msra.mxu0 %v3748_v9  ;;  %v3757_v19 = vpack.c.bf16 %v66_v18, %v65_v17  ;;  %v68_v21 = vld [vmem:[%s5161_s1 + $0x68] sm:$0xff]  ;;  %v69_v23 = vld [vmem:[%s5161_s1 + $0x70] sm:$0xff]  ;;  %v70_v24 = vld [vmem:[%s5161_s1 + $0x78] sm:$0xff]  ;;  %v4392_v4 = vshrl.u32 %v193_v63, 7  ;;  %vm458_vm9 = vcmask 80896   ;;  %vm491_vm13 = vcmask 1041408  }
   0xd   :  { %3750 = vmatprep.subr.bf16.mxu0 %v4196_v3  ;;  %v3760_v22 = vpack.c.bf16 %v68_v21, %v67_v20  ;;  %v3763_v25 = vpack.c.bf16 %v70_v24, %v69_v23  ;;  %v71_v26 = vld [vmem:[%s5161_s1 + $0x80] sm:$0xff]  ;;  %v72_v27 = vld [vmem:[%s5161_s1 + $0x88] sm:$0xff]  ;;  %v73_v29 = vld [vmem:[%s5161_s1 + $0x90] sm:$0xff]  ;;  %vm4201_vm14 = vmmov 1   ;;  %s4203_s22 = smov [#allocation2]  }
   0xe   :  { %v3766_v28 = vpack.c.bf16 %v72_v27, %v71_v26  ;;  %v74_v30 = vld [vmem:[%s5161_s1 + $0x98] sm:$0xff]  ;;  %v75_v32 = vld [vmem:[%s5161_s1 + $0xa0] sm:$0xff]  ;;  %v76_v33 = vld [vmem:[%s5161_s1 + $0xa8] sm:$0xff]  ;;  %v4395_v6 = vsub.s32 0, %v4392_v4  ;;  %v4401_v8 = vsub.s32 1, %v4392_v4  ;;  %s3166_s23 = sshll.u32 %s4203_s22, 4  ;;  %s3167_s23 = int_to_ptr.vmem [resolvable:$true] %s3166_s23 }
   0xf   :  { %v3769_v31 = vpack.c.bf16 %v74_v30, %v73_v29  ;;  %v3772_v34 = vpack.c.bf16 %v76_v33, %v75_v32  ;;  %v77_v35 = vld [vmem:[%s5161_s1 + $0xb0] sm:$0xff]  ;;  %v78_v36 = vld [vmem:[%s5161_s1 + $0xb8] sm:$0xff]  ;;  %v51_v38 = vld [vmem:[%s5160_s0] sm:$0xff]  ;;  %p4177_p1 = scmp.lt.s32.totalorder %s3167_s23, %s3167_s23 }
  0x10   :  { %3752 = vmatpush1.bf16.msra.mxu0 %v3751_v13  ;;  %v3775_v37 = vpack.c.bf16 %v78_v36, %v77_v35  ;;  %v54_v39 = vld [vmem:[%s5160_s0 + $0x18] sm:$0x3]  ;;  %v53_v40 = vld [vmem:[%s5160_s0 + $0x10] sm:$0x3]  ;;  %v79_v41 = vld [vmem:[%s5162_s2] sm:$0xff]  ;;  %s4200_s0 = smov 64  }
  0x11   :  { %3753 = vmatprep.subr.bf16.mxu0 %v4196_v3  ;;  %v80_v45 = vld [vmem:[%s5162_s2 + $0x8] sm:$0x3]  ;;  %v163_v7 = vld [vmem:[%s5164_s4] sm:$0xf]  ;;  %v270_v33 = vld [vmem:[%s5165_s5 + $0x10] sm:$0xff] }
  0x12   :  { %v196_v9 = vrot.slane %v163_v7, %v4395_v6  ;;  %v202_v12 = vrot.slane %v163_v7, %v4401_v8  ;;  %v269_v32 = vld [vmem:[%s5165_s5 + $0x8] sm:$0xff]  ;;  %v271_v35 = vld [vmem:[%s5165_s5 + $0x18] sm:$0xff]  ;;  %vm4475_vm7 = vmpackc.low %vm164_vm1, %vm164_vm1 }
  0x13   :  { %v3781_v36 = vpack.c.bf16 %v271_v35, %v270_v33  ;;  %vm4516_vm15 = vmpackc.low %vm491_vm13, %vm4201_vm14 }
  0x14   :  { %3755 = vmatpush1.bf16.msra.mxu0 %v3754_v16 }
  0x15   :  { %3756 = vmatprep.subr.bf16.mxu0 %v4196_v3 }
  0x18   :  { %3758 = vmatpush1.bf16.msra.mxu0 %v3757_v19 }
  0x19   :  { %3759 = vmatprep.subr.bf16.mxu0 %v4196_v3 }
  0x1c   :  { %3761 = vmatpush1.bf16.msra.mxu0 %v3760_v22 }
  0x1d   :  { %3762 = vmatprep.subr.bf16.mxu0 %v4196_v3 }
  0x20   :  { %3764 = vmatpush1.bf16.msra.mxu0 %v3763_v25 }
  0x21   :  { %3765 = vmatprep.subr.bf16.mxu0 %v4196_v3 }
  0x24   :  { %3767 = vmatpush1.bf16.msra.mxu0 %v3766_v28 }
  0x25   :  { %3768 = vmatprep.subr.bf16.mxu0 %v4196_v3 }
  0x28   :  { %3770 = vmatpush1.bf16.msra.mxu0 %v3769_v31  ;;  %v268_v31 = vld [vmem:[%s5165_s5] sm:$0xff] }
  0x29   :  { %3771 = vmatprep.subr.bf16.mxu0 %v4196_v3 }
  0x2c   :  { %3773 = vmatpush1.bf16.msra.mxu0 %v3772_v34  ;;  %v3777_v34 = vpack.c.bf16 %v269_v32, %v268_v31 }
  0x2d   :  { %3774 = vmatprep.subr.bf16.mxu0 %v4196_v3 }
  0x2e   :  { %3778 = vmatprep.subr.bf16.mxu1 %v3777_v34 }
  0x2f   :  { %3780 = vmatpush3.bf16.msra.mxu1 %v3777_v34 }
  0x30   :  { %3776 = vmatpush1.bf16.msra.mxu0 %v3775_v37  ;;  %3782 = vmatprep.subr.bf16.mxu1 %v3781_v36  ;;  %v4429_v37 = vand.u32 127, %v193_v63 }
  0x32   :  { %vm208_vm3 = vcmp.lt.s32.totalorder %v4429_v37, 8  ;;  %vm212_vm4 = vcmp.ge.s32.totalorder %v4429_v37, 8  ;;  %vm213_vm5 = vcmp.lt.s32.totalorder %v4429_v37, 16  ;;  %vm217_vm10 = vcmp.ge.s32.totalorder %v4429_v37, 16 }
  0x33   :  { %153 = vmatmul.mubr.f32.vlgmr.msra.gmra.mrb[0].mxu0 %v51_v38  ;;  %3784 = vmatpush3.bf16.msra.mxu1 %v3781_v36  ;;  %v4197_v38 = vmov 0.0   ;;  %vm214_vm6 = vmand %vm212_vm4, %vm213_vm5  ;;  %vm218_vm11 = vcmp.lt.s32.totalorder %v4429_v37, 24  ;;  %vm223_vm4 = vcmp.lt.s32.totalorder %v4429_v37, 32 }
  0x34   :  { %3175 = vmatprep.mubr.msk.f32.mxu0 %vm81_vm0, %v54_v39  ;;  %v4433_v39 = vsel %vm208_vm3, 1.0, %v4197_v38  ;;  %vm219_vm12 = vmand %vm217_vm10, %vm218_vm11  ;;  %vm222_vm3 = vcmp.ge.s32.totalorder %v4429_v37, 24 }
  0x35   :  { %vm224_vm5 = vmand %vm222_vm3, %vm223_vm4 }
  0x37   :  { %158 = vmatmul.mubr.f32.gmra.mrb[2].mxu0 %v53_v40 }
 0x106   :  { %v154_v42 = vpop.f32.mrb[0].mxu0 }
 0x107   :  { %v155_v43 = vadd.f32 %v154_v42, %v79_v41  ;;  %v156_v44 = vpop.f32.mrb[1].mxu0 }
 0x109   :  { %v165_v46 = vsel %vm164_vm1, %v155_v43, 0.0 }
 0x10a   :  { %v159_v47 = vpop.f32.mrb[2].mxu0  ;;  %166 = vadd.xlane.f32.xlu0 %v165_v46  ;;  %v4440_v46 = vld [vmem:[%s5169_s9] sm:$0xff] }
 0x10b   :  { %v160_v48 = vadd.f32 %v159_v47, %v80_v45  ;;  %v161_v49 = vpop.f32.mrb[3].mxu0  ;;  %v259_v47 = vrot.slane %v4440_v46, %v4395_v6 }
 0x10d   :  { %v169_v50 = vsel %vm168_vm2, %v160_v48, 0.0 }
 0x10e   :  { %170 = vadd.xlane.f32.xlu0 %v169_v50  ;;  %v265_v50 = vrot.slane %v4440_v46, %v4401_v8 }
 0x197   :  { %v167_v51 = vpop.xlane.xlu0 %166 }
 0x198   :  { %v173_v52 = vmul.f32 0.03125, %v167_v51 }
 0x19a   :  { %v175_v53 = vsub.f32 %v155_v43, %v173_v52 }
 0x19b   :  { %v171_v54 = vpop.xlane.xlu0 %170 }
 0x19c   :  { %v174_v55 = vmul.f32 0.03125, %v171_v54  ;;  %v177_v56 = vmul.f32 %v175_v53, %v175_v53 }
 0x19e   :  { %v176_v57 = vsub.f32 %v160_v48, %v174_v55  ;;  %v179_v58 = vsel %vm164_vm1, %v177_v56, 0.0 }
 0x19f   :  { %180 = vadd.xlane.f32.xlu1 %v179_v58 }
 0x1a0   :  { %v178_v59 = vmul.f32 %v176_v57, %v176_v57 }
 0x1a2   :  { %v182_v60 = vsel %vm168_vm2, %v178_v59, 0.0 }
 0x1a3   :  { %183 = vadd.xlane.f32.xlu1 %v182_v60 }
 0x22c   :  { %v181_v61 = vpop.xlane.xlu1 %180 }
 0x22d   :  { %v185_v62 = vmul.f32 0.03125, %v181_v61 }
 0x22f   :  { %v187_v0 = vadd.f32 1e-05, %v185_v62 }
 0x230   :  { %v184_v1 = vpop.xlane.xlu1 %183 }
 0x231   :  { %4073 = vrsqrt.f32 %v187_v0  ;;  %v186_v2 = vmul.f32 0.03125, %v184_v1 }
 0x233   :  { %v188_v5 = vadd.f32 1e-05, %v186_v2 }
 0x235   :  { %4075 = vrsqrt.f32 %v188_v5  ;;  %v4469_v5 = vsel %vm214_vm6, 1.0, %v4197_v38  ;;  %vm4202_vm6 = vmmov 0  }
 0x23b   :  { %v4074_v10 = vpop.eup %4073 }
 0x23c   :  { %v191_v11 = vmul.f32 %v4074_v10, %v175_v53 }
 0x23e   :  { %v197_v13 = vmul.f32 %v196_v9, %v191_v11 }
 0x23f   :  { %v4076_v14 = vpop.eup %4075 }
 0x240   :  { %v4405_v15 = vadd.f32 %v202_v12, %v197_v13  ;;  %v192_v16 = vmul.f32 %v4076_v14, %v176_v57  ;;  %v4449_v57 = vsub.s32 4, %v4392_v4  ;;  %v4488_v14 = vld [vmem:[%s5163_s3 + $0x8] sm:$0x3] }
 0x242   :  { %v230_v17 = vsel %vm164_vm1, %v4405_v15, 0.0  ;;  %v198_v18 = vmul.f32 %v196_v9, %v192_v16  ;;  %v275_v58 = vrot.slane %v4440_v46, %v4449_v57 }
 0x243   :  { %231 = vadd.xlane.f32.xlu0 %v230_v17 }
 0x244   :  { %v4409_v19 = vadd.f32 %v202_v12, %v198_v18  ;;  %v4493_v18 = vld [vmem:[%s5163_s3] sm:$0xff] }
 0x246   :  { %v233_v20 = vsel %vm168_vm2, %v4409_v19, 0.0 }
 0x247   :  { %234 = vadd.xlane.f32.xlu1 %v233_v20 }
 0x2d0   :  { %v232_v21 = vpop.xlane.xlu0 %231 }
 0x2d1   :  { %v236_v22 = vmul.f32 0.03125, %v232_v21 }
 0x2d3   :  { %v238_v23 = vsub.f32 %v4405_v15, %v236_v22 }
 0x2d4   :  { %v235_v24 = vpop.xlane.xlu1 %234 }
 0x2d5   :  { %v237_v25 = vmul.f32 0.03125, %v235_v24  ;;  %v240_v26 = vmul.f32 %v238_v23, %v238_v23 }
 0x2d7   :  { %v239_v27 = vsub.f32 %v4409_v19, %v237_v25  ;;  %v242_v28 = vsel %vm164_vm1, %v240_v26, 0.0 }
 0x2d8   :  { %243 = vadd.xlane.f32.xlu0 %v242_v28 }
 0x2d9   :  { %v241_v29 = vmul.f32 %v239_v27, %v239_v27 }
 0x2db   :  { %v245_v30 = vsel %vm168_vm2, %v241_v29, 0.0  ;;  %v4509_v29 = vsel %vm219_vm12, 1.0, %v4197_v38 }
 0x2dc   :  { %246 = vadd.xlane.f32.xlu1 %v245_v30 }
 0x2ee   :  { %358 = vrot.lane.b32.xlu0 %v4433_v39, %s4198_s25 }
 0x365   :  { %v244_v40 = vpop.xlane.xlu0 %243 }
 0x366   :  { %v248_v41 = vmul.f32 0.03125, %v244_v40 }
 0x368   :  { %v250_v42 = vadd.f32 1e-05, %v248_v41 }
 0x369   :  { %v247_v43 = vpop.xlane.xlu1 %246  ;;  %v4453_v60 = vpop.permute.xlu0 %358 }
 0x36a   :  { %4077 = vrsqrt.f32 %v250_v42  ;;  %v249_v44 = vmul.f32 0.03125, %v247_v43 }
 0x36c   :  { %v251_v45 = vadd.f32 1e-05, %v249_v44 }
 0x36e   :  { %4079 = vrsqrt.f32 %v251_v45 }
 0x374   :  { %v4078_v48 = vpop.eup %4077 }
 0x375   :  { %v254_v49 = vmul.f32 %v4078_v48, %v238_v23 }
 0x377   :  { %v260_v51 = vmul.f32 %v259_v47, %v254_v49 }
 0x378   :  { %v4080_v52 = vpop.eup %4079 }
 0x379   :  { %v255_v53 = vmul.f32 %v4080_v52, %v239_v27  ;;  %v266_v54 = vadd.f32 %v265_v50, %v260_v51 }
 0x37b   :  { %v261_v55 = vmul.f32 %v259_v47, %v255_v53  ;;  %3449 = vmatprep.mubr.msk.f32.mxu1 %vm164_vm1, %v266_v54 }
 0x37d   :  { %v267_v56 = vadd.f32 %v265_v50, %v261_v55 }
 0x37f   :  { %3450 = vmatmul.mubr.msk.f32.vlgmr.msra.gmra.mrb[0].mxu1 %vm164_vm1, %v267_v56 }
 0x452   :  { %v3451_v59 = vpop.f32.mrb[0].mxu1 }
 0x453   :  { %v4455_v61 = vadd.f32 %v3451_v59, %v275_v58  ;;  %v348_v62 = vpop.f32.mrb[1].mxu1 }
 0x454   :  { %v4457_v63 = vadd.f32 %v348_v62, %v275_v58 }
 0x455   :  { %v362_v0 = vmul.f32 %v4453_v60, %v4455_v61 }
 0x456   :  { %v361_v1 = vmul.f32 %v4453_v60, %v4457_v63  ;;  %3456 = vmatprep.mubr.msk.f32.mxu1 %vm164_vm1, %v4457_v63  ;;  %v4028_v30 = vpack.i.bf16 %v4455_v61, %v4457_v63 }
 0x458   :  { %v4023_v2 = vpack.i.bf16 %v362_v0, %v361_v1 }
 0x45a   :  { %4024 = vrot.lane.b32.xlu1 %v4023_v2, %s4199_s28 }
 0x45e   :  { %576 = vrot.lane.b32.xlu1 %v4469_v5, %s4198_s25 }
 0x4cc   :  { %v4025_v7 = vpop.permute.xlu1 %4024 }
 0x4cd   :  { %v4027_v9 = vunpack.i.h.bf16 %v4025_v7  ;;  %v4026_v10 = vunpack.i.l.bf16 %v4025_v7  ;;  %v4561_v7 = vsel %vm224_vm5, 1.0, %v4197_v38 }
 0x4cf   :  { %v3785_v12 = vpack.c.bf16 %v4027_v9, %v4026_v10 }
 0x4d0   :  { %v4499_v25 = vpop.permute.xlu1 %576 }
 0x4d1   :  { %3787 = vmatprep.subr.msk.bf16.mxu1 %vm4475_vm7, %v3785_v12  ;;  %v579_v26 = vmul.f32 %v4499_v25, %v4457_v63  ;;  %v580_v27 = vmul.f32 %v4499_v25, %v4455_v61 }
 0x4d2   :  { %3790 = vmatpush3.bf16.xpose.msk.msra.mxu1 %vm4475_vm7, %v3785_v12 }
 0x4d3   :  { %v4033_v28 = vpack.i.bf16 %v580_v27, %v579_v26 }
 0x4d9   :  { %3457 = vmatmul.mubr.msk.f32.vlgmr.msra.gmra.mrb[2].mxu1 %vm164_vm1, %v4455_v61 }
 0x5ac   :  { %v3458_v13 = vpop.f32.mrb[2].mxu1 }
 0x5ad   :  { %v455_v16 = vmul.f32 0.35355338, %v3458_v13  ;;  %v445_v17 = vpop.f32.mrb[3].mxu1 }
 0x5ae   :  { %v454_v20 = vmul.f32 0.35355338, %v445_v17 }
 0x5af   :  { %v457_v21 = vadd.f32 %v455_v16, %v4488_v14 }
 0x5b0   :  { %v456_v22 = vadd.f32 %v454_v20, %v4493_v18 }
 0x5b1   :  { %v463_v23 = vsel %vm462_vm8, %v457_v21, -inf }
 0x5b2   :  { %464 = vmax.xlane.f32.xlu0 %v463_v23  ;;  %v459_v24 = vsel %vm458_vm9, %v456_v22, -inf }
 0x5b3   :  { %460 = vmax.xlane.f32.xlu1 %v459_v24 }
 0x5c4   :  { %4034 = vrot.lane.b32.xlu1 %v4033_v28, %s4199_s28 }
 0x5c8   :  { %4029 = vrot.lane.b32.xlu0 %v4028_v30, %s4200_s0  ;;  %778 = vrot.lane.b32.xlu1 %v4509_v29, %s4198_s25 }
 0x63f   :  { %v465_v31 = vpop.xlane.xlu0 %464 }
 0x640   :  { %v467_v32 = vsub.f32 %v457_v21, %v465_v31  ;;  %v461_v33 = vpop.xlane.xlu1 %460 }
 0x641   :  { %v466_v34 = vsub.f32 %v456_v22, %v461_v33 }
 0x642   :  { %v470_v35 = vmul.f32 1.442695, %v467_v32 }
 0x643   :  { %v468_v36 = vmul.f32 1.442695, %v466_v34  ;;  %v4030_v40 = vpop.permute.xlu0 %4029 }
 0x644   :  { %v4032_v41 = vunpack.i.h.bf16 %v4030_v40  ;;  %v4031_v42 = vunpack.i.l.bf16 %v4030_v40  ;;  %v4035_v43 = vpop.permute.xlu1 %4034 }
 0x645   :  { %4081 = vpow2.f32 %v468_v36  ;;  %v4037_v44 = vunpack.i.h.bf16 %v4035_v43  ;;  %v4036_v45 = vunpack.i.l.bf16 %v4035_v43 }
 0x646   :  { %4083 = vpow2.f32 %v470_v35  ;;  %v3791_v48 = vpack.c.bf16 %v4032_v41, %v4031_v42 }
 0x647   :  { %v3797_v49 = vpack.c.bf16 %v4037_v44, %v4036_v45 }
 0x648   :  { %3793 = vmatprep.subr.msk.bf16.mxu1 %vm4516_vm15, %v3791_v48  ;;  %3829 = vmatprep.subr.msk.bf16.mxu0 %vm4516_vm15, %v3791_v48  ;;  %v4558_v2 = vpop.permute.xlu1 %778 }
 0x649   :  { %3796 = vmatpush3.bf16.msk.msra.mxu1 %vm4516_vm15, %v3791_v48  ;;  %3832 = vmatpush3.bf16.msk.msra.mxu0 %vm4516_vm15, %v3791_v48  ;;  %v781_v9 = vmul.f32 %v4558_v2, %v4457_v63  ;;  %v782_v10 = vmul.f32 %v4558_v2, %v4455_v61 }
 0x64a   :  { %3799 = vmatprep.subr.msk.bf16.mxu1 %vm4475_vm7, %v3797_v49 }
 0x64b   :  { %v4038_v12 = vpack.i.bf16 %v782_v10, %v781_v9 }
 0x64f   :  { %v4530_v50 = vpop.eup %4081 }
 0x650   :  { %v4532_v51 = vpop.eup %4083  ;;  %3463 = vmatprep.mubr.msk.f32.mxu1 %vm458_vm9, %v4530_v50 }
 0x651   :  { %3464 = vmatmul.mubr.msk.f32.vlgmr.msra.gmra.mrb[4].mxu1 %vm458_vm9, %v4532_v51 }
 0x652   :  { %3802 = vmatpush3.bf16.xpose.msk.msra.mxu1 %vm4475_vm7, %v3797_v49  ;;  %3470 = vmatprep.mubr.msk.f32.mxu1 %vm164_vm1, %v4457_v63  ;;  %v475_v49 = vsel %vm462_vm8, %v4532_v51, 0.0 }
 0x653   :  { %3805 = vmatprep.subr.msk.bf16.mxu1 %vm4516_vm15, %v3791_v48 }
 0x659   :  { %3471 = vmatmul.mubr.msk.f32.vlgmr.msra.gmra.mrb[6].mxu1 %vm164_vm1, %v4455_v61 }
 0x65a   :  { %3808 = vmatpush3.bf16.msk.msra.mxu1 %vm4516_vm15, %v3791_v48 }
 0x724   :  { %v4548_v52 = vpop.f32.mrb[4].mxu1 }
 0x725   :  { %v4550_v53 = vpop.f32.mrb[5].mxu1 }
 0x72c   :  { %v3472_v54 = vpop.f32.mrb[6].mxu1 }
 0x72d   :  { %v667_v55 = vmul.f32 0.35355338, %v3472_v54  ;;  %v657_v56 = vpop.f32.mrb[7].mxu1 }
 0x72e   :  { %v666_v58 = vmul.f32 0.35355338, %v657_v56 }
 0x72f   :  { %v669_v59 = vadd.f32 %v667_v55, %v4488_v14 }
 0x730   :  { %v668_v62 = vadd.f32 %v666_v58, %v4493_v18 }
 0x731   :  { %v673_v0 = vsel %vm462_vm8, %v669_v59, -inf }
 0x732   :  { %674 = vmax.xlane.f32.xlu1 %v673_v0  ;;  %v670_v1 = vsel %vm458_vm9, %v668_v62, -inf }
 0x733   :  { %671 = vmax.xlane.f32.xlu0 %v670_v1 }
 0x743   :  { %980 = vrot.lane.b32.xlu1 %v4561_v7, %s4198_s25 }
 0x749   :  { %4039 = vrot.lane.b32.xlu0 %v4038_v12, %s4199_s28 }
 0x7bf   :  { %v675_v13 = vpop.xlane.xlu1 %674 }
 0x7c0   :  { %v677_v37 = vsub.f32 %v669_v59, %v675_v13  ;;  %v672_v16 = vpop.xlane.xlu0 %671 }
 0x7c1   :  { %v676_v17 = vsub.f32 %v668_v62, %v672_v16 }
 0x7c2   :  { %v680_v20 = vmul.f32 1.442695, %v677_v37 }
 0x7c3   :  { %v678_v21 = vmul.f32 1.442695, %v676_v17  ;;  %v4595_v43 = vpop.permute.xlu1 %980 }
 0x7c4   :  { %v4040_v22 = vpop.permute.xlu0 %4039  ;;  %v983_v44 = vmul.f32 %v4595_v43, %v4457_v63  ;;  %v984_v45 = vmul.f32 %v4595_v43, %v4455_v61 }
 0x7c5   :  { %4085 = vpow2.f32 %v678_v21  ;;  %v4042_v23 = vunpack.i.h.bf16 %v4040_v22  ;;  %v4041_v24 = vunpack.i.l.bf16 %v4040_v22 }
 0x7c6   :  { %4087 = vpow2.f32 %v680_v20 }
 0x7c7   :  { %v3809_v26 = vpack.c.bf16 %v4042_v23, %v4041_v24 }
 0x7c9   :  { %3811 = vmatprep.subr.msk.bf16.mxu1 %vm4475_vm7, %v3809_v26 }
 0x7cf   :  { %v4086_v27 = vpop.eup %4085 }
 0x7d0   :  { %v4572_v28 = vpop.eup %4087  ;;  %3477 = vmatprep.mubr.msk.f32.mxu1 %vm458_vm9, %v4086_v27 }
 0x7d1   :  { %3478 = vmatmul.mubr.msk.f32.vlgmr.msra.gmra.mrb[8].mxu1 %vm458_vm9, %v4572_v28 }
 0x7d2   :  { %3814 = vmatpush3.bf16.xpose.msk.msra.mxu1 %vm4475_vm7, %v3809_v26  ;;  %3484 = vmatprep.mubr.msk.f32.mxu1 %vm164_vm1, %v4457_v63  ;;  %v682_v26 = vsel %vm458_vm9, %v4086_v27, 0.0 }
 0x7d3   :  { %3817 = vmatprep.subr.msk.bf16.mxu1 %vm4516_vm15, %v3791_v48 }
 0x7d9   :  { %3485 = vmatmul.mubr.msk.f32.vlgmr.msra.gmra.mrb[10].mxu1 %vm164_vm1, %v4455_v61 }
 0x7da   :  { %3820 = vmatpush3.bf16.msk.msra.mxu1 %vm4516_vm15, %v3791_v48  ;;  %v4043_v48 = vpack.i.bf16 %v984_v45, %v983_v44 }
 0x8a4   :  { %v4587_v30 = vpop.f32.mrb[8].mxu1 }
 0x8a5   :  { %v4589_v31 = vpop.f32.mrb[9].mxu1 }
 0x8ac   :  { %v3486_v32 = vpop.f32.mrb[10].mxu1 }
 0x8ad   :  { %v869_v33 = vmul.f32 0.35355338, %v3486_v32  ;;  %v859_v34 = vpop.f32.mrb[11].mxu1  ;;  %v685_v32 = vsel %vm462_vm8, %v4572_v28, 0.0 }
 0x8ae   :  { %v868_v35 = vmul.f32 0.35355338, %v859_v34 }
 0x8af   :  { %v871_v36 = vadd.f32 %v869_v33, %v4488_v14 }
 0x8b0   :  { %v870_v40 = vadd.f32 %v868_v35, %v4493_v18 }
 0x8b1   :  { %v875_v41 = vsel %vm462_vm8, %v871_v36, -inf }
 0x8b2   :  { %876 = vmax.xlane.f32.xlu1 %v875_v41  ;;  %v872_v42 = vsel %vm458_vm9, %v870_v40, -inf }
 0x8b3   :  { %873 = vmax.xlane.f32.xlu0 %v872_v42 }
 0x8c9   :  { %4044 = vrot.lane.b32.xlu0 %v4043_v48, %s4199_s28 }
 0x8e8   :  { %476 = vadd.xlane.f32.xlu0 %v475_v49 }
 0x93f   :  { %v877_v54 = vpop.xlane.xlu1 %876 }
 0x940   :  { %v879_v55 = vsub.f32 %v871_v36, %v877_v54  ;;  %v874_v56 = vpop.xlane.xlu0 %873 }
 0x941   :  { %v878_v58 = vsub.f32 %v870_v40, %v874_v56 }
 0x942   :  { %v882_v59 = vmul.f32 1.442695, %v879_v55 }
 0x943   :  { %v880_v62 = vmul.f32 1.442695, %v878_v58 }
 0x944   :  { %v4045_v0 = vpop.permute.xlu0 %4044 }
 0x945   :  { %4089 = vpow2.f32 %v880_v62  ;;  %v4047_v1 = vunpack.i.h.bf16 %v4045_v0  ;;  %v4046_v9 = vunpack.i.l.bf16 %v4045_v0 }
 0x946   :  { %4091 = vpow2.f32 %v882_v59 }
 0x947   :  { %v3821_v10 = vpack.c.bf16 %v4047_v1, %v4046_v9 }
 0x949   :  { %3823 = vmatprep.subr.msk.bf16.mxu1 %vm4475_vm7, %v3821_v10 }
 0x94f   :  { %v4090_v12 = vpop.eup %4089 }
 0x950   :  { %v4092_v13 = vpop.eup %4091  ;;  %3491 = vmatprep.mubr.msk.f32.mxu1 %vm458_vm9, %v4090_v12  ;;  %v884_v33 = vsel %vm458_vm9, %v4090_v12, 0.0 }
 0x951   :  { %3492 = vmatmul.mubr.msk.f32.vlgmr.msra.gmra.mrb[12].mxu1 %vm458_vm9, %v4092_v13  ;;  %v887_v34 = vsel %vm462_vm8, %v4092_v13, 0.0 }
 0x952   :  { %3826 = vmatpush3.bf16.xpose.msk.msra.mxu1 %vm4475_vm7, %v3821_v10  ;;  %3498 = vmatprep.mubr.msk.f32.mxu1 %vm164_vm1, %v4457_v63 }
 0x959   :  { %3499 = vmatmul.mubr.msk.f32.vlgmr.msra.gmra.mrb[14].mxu1 %vm164_vm1, %v4455_v61  ;;  %v472_v61 = vsel %vm458_vm9, %v4530_v50, 0.0 }
 0x975   :  { %v477_v27 = vpop.xlane.xlu0 %476 }
 0xa24   :  { %v4614_v51 = vpop.f32.mrb[12].mxu1 }
 0xa25   :  { %v4616_v37 = vpop.f32.mrb[13].mxu1 }
 0xa2c   :  { %v3500_v16 = vpop.f32.mrb[14].mxu1 }
 0xa2d   :  { %v1061_v17 = vpop.f32.mrb[15].mxu1  ;;  %v1071_v20 = vmul.f32 0.35355338, %v3500_v16 }
 0xa2e   :  { %v1070_v21 = vmul.f32 0.35355338, %v1061_v17 }
 0xa2f   :  { %v1073_v24 = vadd.f32 %v1071_v20, %v4488_v14 }
 0xa30   :  { %v1072_v22 = vadd.f32 %v1070_v21, %v4493_v18 }
 0xa31   :  { %v1077_v63 = vsel %vm462_vm8, %v1073_v24, -inf }
 0xa32   :  { %v1074_v23 = vsel %vm458_vm9, %v1072_v22, -inf }
 0xa33   :  { %1075 = vmax.xlane.f32.xlu1 %v1074_v23 }
 0xa37   :  { %1078 = vmax.xlane.f32.xlu1 %v1077_v63 }
 0xa3b   :  { %473 = vadd.xlane.f32.xlu1 %v472_v61 }
 0xa3f   :  { %683 = vadd.xlane.f32.xlu1 %v682_v26 }
 0xa43   :  { %686 = vadd.xlane.f32.xlu1 %v685_v32 }
 0xa47   :  { %885 = vadd.xlane.f32.xlu1 %v884_v33 }
 0xa4b   :  { %888 = vadd.xlane.f32.xlu1 %v887_v34 }
 0xac0   :  { %v1076_v35 = vpop.xlane.xlu1 %1075 }
 0xac1   :  { %v1080_v36 = vsub.f32 %v1072_v22, %v1076_v35  ;;  %v1184_v35 = vld [vmem:[%s5166_s6 + $0x18] sm:$0xff] }
 0xac3   :  { %v1082_v40 = vmul.f32 1.442695, %v1080_v36 }
 0xac4   :  { %v1079_v41 = vpop.xlane.xlu1 %1078 }
 0xac5   :  { %4093 = vpow2.f32 %v1082_v40  ;;  %v1081_v50 = vsub.f32 %v1073_v24, %v1079_v41 }
 0xac7   :  { %v1084_v42 = vmul.f32 1.442695, %v1081_v50 }
 0xac8   :  { %v474_v44 = vpop.xlane.xlu1 %473 }
 0xac9   :  { %4095 = vpow2.f32 %v1084_v42 }
 0xaca   :  { %4097 = vrcp.f32 %v474_v44 }
 0xacb   :  { %4099 = vrcp.f32 %v477_v27 }
 0xacc   :  { %v684_v28 = vpop.xlane.xlu1 %683 }
 0xacd   :  { %4101 = vrcp.f32 %v684_v28 }
 0xacf   :  { %v4094_v45 = vpop.eup %4093 }
 0xad0   :  { %3505 = vmatprep.mubr.msk.f32.mxu0 %vm458_vm9, %v4094_v45  ;;  %v687_v48 = vpop.xlane.xlu1 %686  ;;  %v1086_v49 = vsel %vm458_vm9, %v4094_v45, 0.0 }
 0xad1   :  { %4103 = vrcp.f32 %v687_v48  ;;  %1087 = vadd.xlane.f32.xlu1 %v1086_v49 }
 0xad3   :  { %v4096_v54 = vpop.eup %4095 }
 0xad4   :  { %v4098_v55 = vpop.eup %4097  ;;  %3506 = vmatmul.mubr.msk.f32.vlgmr.msra.gmra.mrb[4].mxu0 %vm458_vm9, %v4096_v54  ;;  %v886_v56 = vpop.xlane.xlu1 %885  ;;  %v1089_v58 = vsel %vm462_vm8, %v4096_v54, 0.0 }
 0xad5   :  { %4105 = vrcp.f32 %v886_v56  ;;  %1090 = vadd.xlane.f32.xlu1 %v1089_v58  ;;  %v4100_v59 = vpop.eup %4099  ;;  %v569_v62 = vmul.f32 %v4098_v55, %v4433_v39  ;;  %v1270_v55 = vsub.s32 5, %v4392_v4 }
 0xad6   :  { %v570_v10 = vmul.f32 %v4100_v59, %v4433_v39 }
 0xad7   :  { %v4102_v0 = vpop.eup %4101  ;;  %v571_v12 = vmul.f32 %v569_v62, %v4550_v53  ;;  %v1181_v53 = vld [vmem:[%s5166_s6] sm:$0xff]  ;;  %v1271_v58 = vrot.slane %v4440_v46, %v1270_v55 }
 0xad8   :  { %v889_v1 = vpop.xlane.xlu1 %888  ;;  %v771_v9 = vmul.f32 %v4102_v0, %v4469_v5  ;;  %v572_v21 = vmul.f32 %v4548_v52, %v570_v10 }
 0xad9   :  { %4107 = vrcp.f32 %v889_v1 }
 0xada   :  { %v773_v13 = vmul.f32 %v771_v9, %v4589_v31  ;;  %v1182_v31 = vld [vmem:[%s5166_s6 + $0x8] sm:$0xff] }
 0xadb   :  { %v4104_v16 = vpop.eup %4103  ;;  %v3833_v32 = vpack.c.bf16 %v1182_v31, %v1181_v53  ;;  %v1314_v53 = vld [vmem:[%s5167_s7 + $0x10] sm:$0xff]  ;;  %v1315_v31 = vld [vmem:[%s5167_s7 + $0x18] sm:$0xff] }
 0xadc   :  { %v772_v17 = vmul.f32 %v4104_v16, %v4469_v5  ;;  %v775_v20 = vadd.f32 %v773_v13, %v571_v12 }
 0xadd   :  { %3834 = vmatprep.subr.bf16.mxu1 %v3833_v32 }
 0xade   :  { %v774_v22 = vmul.f32 %v4587_v30, %v772_v17  ;;  %3836 = vmatpush3.bf16.msra.mxu1 %v3833_v32  ;;  %v3845_v32 = vpack.c.bf16 %v1315_v31, %v1314_v53  ;;  %v1433_v53 = vld [vmem:[%s5168_s8 + $0x70] sm:$0xff]  ;;  %v1434_v31 = vld [vmem:[%s5168_s8 + $0x78] sm:$0xff] }
 0xadf   :  { %v4106_v23 = vpop.eup %4105 }
 0xae0   :  { %v776_v24 = vadd.f32 %v774_v22, %v572_v21  ;;  %v973_v63 = vmul.f32 %v4106_v23, %v4509_v29 }
 0xae2   :  { %v975_v61 = vmul.f32 %v973_v63, %v4616_v37  ;;  %v1183_v37 = vld [vmem:[%s5166_s6 + $0x10] sm:$0xff]  ;;  %v1312_v63 = vld [vmem:[%s5167_s7] sm:$0xff] }
 0xae3   :  { %v4108_v26 = vpop.eup %4107  ;;  %v3837_v36 = vpack.c.bf16 %v1184_v35, %v1183_v37 }
 0xae4   :  { %v974_v52 = vmul.f32 %v4108_v26, %v4509_v29  ;;  %v977_v33 = vadd.f32 %v975_v61, %v775_v20  ;;  %v1313_v61 = vld [vmem:[%s5167_s7 + $0x8] sm:$0xff] }
 0xae5   :  { %3838 = vmatprep.subr.bf16.mxu1 %v3837_v36  ;;  %v3841_v26 = vpack.c.bf16 %v1313_v61, %v1312_v63  ;;  %v1431_v63 = vld [vmem:[%s5168_s8 + $0x60] sm:$0xff]  ;;  %v1432_v61 = vld [vmem:[%s5168_s8 + $0x68] sm:$0xff] }
 0xae6   :  { %v976_v30 = vmul.f32 %v4614_v51, %v974_v52  ;;  %3840 = vmatpush3.bf16.msra.mxu1 %v3837_v36  ;;  %v4692_v36 = vsub.s32 2, %v4392_v4 }
 0xae7   :  { %3842 = vmatprep.subr.bf16.mxu0 %v3841_v26 }
 0xae8   :  { %v978_v34 = vadd.f32 %v976_v30, %v776_v24  ;;  %3844 = vmatpush3.bf16.msra.mxu0 %v3841_v26  ;;  %v3873_v26 = vpack.c.bf16 %v1432_v61, %v1431_v63 }
 0xae9   :  { %3846 = vmatprep.subr.bf16.mxu0 %v3845_v32 }
 0xaec   :  { %3848 = vmatpush3.bf16.msra.mxu0 %v3845_v32  ;;  %v3877_v32 = vpack.c.bf16 %v1434_v31, %v1433_v53 }
 0xb5e   :  { %v1088_v40 = vpop.xlane.xlu1 %1087 }
 0xb62   :  { %v1091_v41 = vpop.xlane.xlu1 %1090 }
 0xb63   :  { %4109 = vrcp.f32 %v1091_v41  ;;  %v1303_v41 = vrot.slane %v4440_v46, %v4692_v36 }
 0xb64   :  { %4111 = vrcp.f32 %v1088_v40  ;;  %v4695_v40 = vsub.s32 3, %v4392_v4 }
 0xb6d   :  { %v4110_v50 = vpop.eup %4109 }
 0xb6e   :  { %v4112_v42 = vpop.eup %4111  ;;  %v1176_v51 = vmul.f32 %v4110_v50, %v4561_v7 }
 0xb6f   :  { %v1175_v27 = vmul.f32 %v4112_v42, %v4561_v7 }
 0xba7   :  { %v3507_v44 = vpop.f32.mrb[4].mxu0 }
 0xba8   :  { %v1178_v28 = vmul.f32 %v3507_v44, %v1176_v51  ;;  %v1166_v45 = vpop.f32.mrb[5].mxu0  ;;  %v1309_v51 = vrot.slane %v4440_v46, %v4695_v40 }
 0xba9   :  { %v1177_v48 = vmul.f32 %v1175_v27, %v1166_v45 }
 0xbaa   :  { %v1180_v49 = vadd.f32 %v1178_v28, %v978_v34 }
 0xbab   :  { %v1179_v54 = vadd.f32 %v1177_v48, %v977_v33 }
 0xbad   :  { %3516 = vmatprep.mubr.msk.f32.mxu1 %vm164_vm1, %v1179_v54  ;;  %v1419_v54 = vld [vmem:[%s5168_s8] sm:$0xff] }
 0xbae   :  { %3517 = vmatmul.mubr.msk.f32.vlgmr.msra.gmra.mrb[16].mxu1 %vm164_vm1, %v1180_v49 }
 0xc81   :  { %v3518_v56 = vpop.f32.mrb[16].mxu1 }
 0xc82   :  { %v1257_v59 = vpop.f32.mrb[17].mxu1  ;;  %v1267_v62 = vadd.f32 %v3518_v56, %v4409_v19  ;;  %v1420_v56 = vld [vmem:[%s5168_s8 + $0x8] sm:$0xff] }
 0xc83   :  { %v1266_v0 = vadd.f32 %v1257_v59, %v4405_v15  ;;  %v1421_v59 = vld [vmem:[%s5168_s8 + $0x10] sm:$0xff] }
 0xc84   :  { %v4669_v9 = vadd.f32 %v1271_v58, %v1267_v62  ;;  %v1422_v62 = vld [vmem:[%s5168_s8 + $0x18] sm:$0xff] }
 0xc85   :  { %v4667_v1 = vadd.f32 %v1271_v58, %v1266_v0  ;;  %v3849_v58 = vpack.c.bf16 %v1420_v56, %v1419_v54  ;;  %v3853_v0 = vpack.c.bf16 %v1422_v62, %v1421_v59 }
 0xc86   :  { %v1277_v12 = vsel %vm168_vm2, %v4669_v9, 0.0 }
 0xc87   :  { %v1274_v10 = vsel %vm164_vm1, %v4667_v1, 0.0  ;;  %3850 = vmatprep.subr.bf16.mxu1 %v3849_v58 }
 0xc88   :  { %1275 = vadd.xlane.f32.xlu1 %v1274_v10  ;;  %3852 = vmatpush3.bf16.msra.mxu1 %v3849_v58  ;;  %v1423_v10 = vld [vmem:[%s5168_s8 + $0x20] sm:$0xff] }
 0xc89   :  { %3854 = vmatprep.subr.bf16.mxu1 %v3853_v0 }
 0xc8c   :  { %1278 = vadd.xlane.f32.xlu1 %v1277_v12  ;;  %3856 = vmatpush3.bf16.msra.mxu1 %v3853_v0  ;;  %v1424_v12 = vld [vmem:[%s5168_s8 + $0x28] sm:$0xff] }
 0xd15   :  { %v1276_v13 = vpop.xlane.xlu1 %1275 }
 0xd16   :  { %v1280_v16 = vmul.f32 0.03125, %v1276_v13  ;;  %v3857_v13 = vpack.c.bf16 %v1424_v12, %v1423_v10 }
 0xd18   :  { %v1282_v17 = vsub.f32 %v4667_v1, %v1280_v16  ;;  %3858 = vmatprep.subr.bf16.mxu1 %v3857_v13  ;;  %v1425_v16 = vld [vmem:[%s5168_s8 + $0x30] sm:$0xff] }
 0xd19   :  { %v1279_v20 = vpop.xlane.xlu1 %1278  ;;  %3860 = vmatpush3.bf16.msra.mxu1 %v3857_v13  ;;  %v1514_v13 = vsub.s32 7, %v4392_v4 }
 0xd1a   :  { %v1281_v19 = vmul.f32 0.03125, %v1279_v20  ;;  %v1284_v21 = vmul.f32 %v1282_v17, %v1282_v17 }
 0xd1c   :  { %v1283_v15 = vsub.f32 %v4669_v9, %v1281_v19  ;;  %v1286_v22 = vsel %vm164_vm1, %v1284_v21, 0.0  ;;  %v1427_v19 = vld [vmem:[%s5168_s8 + $0x40] sm:$0xff]  ;;  %v1428_v21 = vld [vmem:[%s5168_s8 + $0x48] sm:$0xff] }
 0xd1d   :  { %1287 = vadd.xlane.f32.xlu1 %v1286_v22  ;;  %v3865_v22 = vpack.c.bf16 %v1428_v21, %v1427_v19 }
 0xd1e   :  { %v1285_v23 = vmul.f32 %v1283_v15, %v1283_v15 }
 0xd20   :  { %v1289_v24 = vsel %vm168_vm2, %v1285_v23, 0.0  ;;  %v1430_v23 = vld [vmem:[%s5168_s8 + $0x58] sm:$0xff] }
 0xd21   :  { %1290 = vadd.xlane.f32.xlu0 %v1289_v24 }
 0xdaa   :  { %v1288_v52 = vpop.xlane.xlu1 %1287 }
 0xdab   :  { %v1292_v33 = vmul.f32 0.03125, %v1288_v52  ;;  %v1318_v52 = vsub.s32 6, %v4392_v4  ;;  %v2813_v4 = vld [vmem:[%s5170_s10] sm:$0xff] }
 0xdad   :  { %v1294_v30 = vadd.f32 1e-05, %v1292_v33  ;;  %v1319_v33 = vrot.slane %v4440_v46, %v1318_v52 }
 0xdae   :  { %v1291_v34 = vpop.xlane.xlu0 %1290 }
 0xdaf   :  { %4113 = vrsqrt.f32 %v1294_v30  ;;  %v1293_v37 = vmul.f32 0.03125, %v1291_v34 }
 0xdb1   :  { %v1295_v35 = vadd.f32 1e-05, %v1293_v37 }
 0xdb3   :  { %4115 = vrsqrt.f32 %v1295_v35 }
 0xdb9   :  { %v4114_v50 = vpop.eup %4113 }
 0xdba   :  { %v1298_v42 = vmul.f32 %v4114_v50, %v1282_v17  ;;  %v1426_v17 = vld [vmem:[%s5168_s8 + $0x38] sm:$0xff] }
 0xdbb   :  { %v3861_v20 = vpack.c.bf16 %v1426_v17, %v1425_v16  ;;  %v1515_v16 = vrot.slane %v4440_v46, %v1514_v13 }
 0xdbc   :  { %v1304_v44 = vmul.f32 %v1303_v41, %v1298_v42 }
 0xdbd   :  { %v4116_v27 = vpop.eup %4115  ;;  %3862 = vmatprep.subr.bf16.mxu1 %v3861_v20 }
 0xdbe   :  { %v1299_v28 = vmul.f32 %v4116_v27, %v1283_v15  ;;  %v1310_v45 = vadd.f32 %v1309_v51, %v1304_v44  ;;  %v1429_v15 = vld [vmem:[%s5168_s8 + $0x50] sm:$0xff]  ;;  %3864 = vmatpush3.bf16.msra.mxu1 %v3861_v20 }
 0xdbf   :  { %v3869_v24 = vpack.c.bf16 %v1430_v23, %v1429_v15  ;;  %3866 = vmatprep.subr.bf16.mxu1 %v3865_v22 }
 0xdc0   :  { %v1305_v48 = vmul.f32 %v1303_v41, %v1299_v28  ;;  %3527 = vmatprep.mubr.msk.f32.mxu0 %vm164_vm1, %v1310_v45 }
 0xdc2   :  { %v1311_v49 = vadd.f32 %v1309_v51, %v1305_v48  ;;  %3868 = vmatpush3.bf16.msra.mxu1 %v3865_v22 }
 0xdc3   :  { %3870 = vmatprep.subr.bf16.mxu1 %v3869_v24 }
 0xdc4   :  { %3528 = vmatmul.mubr.msk.f32.vlgmr.msra.gmra.mrb[6].mxu0 %vm164_vm1, %v1311_v49 }
 0xdc6   :  { %3872 = vmatpush3.bf16.msra.mxu1 %v3869_v24 }
 0xdc7   :  { %3874 = vmatprep.subr.bf16.mxu1 %v3873_v26 }
 0xdca   :  { %3876 = vmatpush3.bf16.msra.mxu1 %v3873_v26 }
 0xdcb   :  { %3878 = vmatprep.subr.bf16.mxu1 %v3877_v32 }
 0xdce   :  { %3880 = vmatpush3.bf16.msra.mxu1 %v3877_v32 }
 0xe97   :  { %v3529_v30 = vpop.f32.mrb[6].mxu0 }
 0xe98   :  { %v1398_v34 = vadd.f32 %v3529_v30, %v1319_v33  ;;  %v1392_v37 = vpop.f32.mrb[7].mxu0  ;;  %v3215_v30 = vld [vmem:[%s5165_s5 + $0x20] sm:$0xff] }
 0xe99   :  { %v1393_v35 = vadd.f32 %v1392_v37, %v1319_v33 }
 0xe9a   :  { %v1402_v41 = vmul.f32 %v1398_v34, %v1398_v34 }
 0xe9b   :  { %v1401_v50 = vmul.f32 %v1393_v35, %v1393_v35 }
 0xe9c   :  { %v1404_v42 = vmul.f32 %v1402_v41, %v1398_v34  ;;  %v3218_v41 = vld [vmem:[%s5165_s5 + $0x38] sm:$0xff] }
 0xe9d   :  { %v1403_v51 = vmul.f32 %v1401_v50, %v1393_v35 }
 0xe9e   :  { %v1406_v44 = vmul.f32 0.044715, %v1404_v42 }
 0xe9f   :  { %v1405_v27 = vmul.f32 0.044715, %v1403_v51 }
 0xea0   :  { %v1408_v28 = vadd.f32 %v1406_v44, %v1398_v34 }
 0xea1   :  { %v1407_v45 = vadd.f32 %v1405_v27, %v1393_v35 }
 0xea2   :  { %v1410_v48 = vmul.f32 0.7978846, %v1408_v28 }
 0xea3   :  { %v1409_v49 = vmul.f32 0.7978846, %v1407_v45 }
 0xea4   :  { %4117 = vtanh.f32 %v1410_v48  ;;  %v4788_v48 = vld [vmem:[%s5169_s9 + $0x8] sm:$0xff] }
 0xea5   :  { %4119 = vtanh.f32 %v1409_v49  ;;  %v1549_v49 = vrot.slane %v4788_v48, %v4395_v6 }
 0xeae   :  { %v4118_v54 = vpop.eup %4117 }
 0xeaf   :  { %v4120_v56 = vpop.eup %4119  ;;  %v1414_v58 = vadd.f32 1.0, %v4118_v54 }
 0xeb0   :  { %v1413_v59 = vadd.f32 1.0, %v4120_v56 }
 0xeb1   :  { %v1416_v62 = vmul.f32 0.5, %v1414_v58 }
 0xeb2   :  { %v1415_v0 = vmul.f32 0.5, %v1413_v59 }
 0xeb3   :  { %v1418_v12 = vmul.f32 %v1416_v62, %v1398_v34  ;;  %v3216_v34 = vld [vmem:[%s5165_s5 + $0x28] sm:$0xff]  ;;  %v1555_v62 = vrot.slane %v4788_v48, %v4401_v8 }
 0xeb4   :  { %v1417_v10 = vmul.f32 %v1415_v0, %v1393_v35  ;;  %v3881_v37 = vpack.c.bf16 %v3216_v34, %v3215_v30  ;;  %v3217_v35 = vld [vmem:[%s5165_s5 + $0x30] sm:$0xff] }
 0xeb5   :  { %v3885_v50 = vpack.c.bf16 %v3218_v41, %v3217_v35 }
 0xeb6   :  { %3562 = vmatprep.mubr.f32.mxu1 %v1417_v10  ;;  %3882 = vmatprep.subr.bf16.mxu0 %v3881_v37 }
 0xeb7   :  { %3563 = vmatmul.mubr.f32.vlgmr.msra.gmra.mrb[18].mxu1 %v1418_v12  ;;  %3884 = vmatpush3.bf16.msra.mxu0 %v3881_v37 }
 0xeb8   :  { %3886 = vmatprep.subr.bf16.mxu0 %v3885_v50 }
 0xebb   :  { %3888 = vmatpush3.bf16.msra.mxu0 %v3885_v50 }
 0xf8a   :  { %v3564_v17 = vpop.f32.mrb[18].mxu1 }
 0xf8b   :  { %v1511_v20 = vadd.f32 %v3564_v17, %v4669_v9  ;;  %v1501_v19 = vpop.f32.mrb[19].mxu1  ;;  %v1566_v17 = vrot.slane %v4788_v48, %v4449_v57 }
 0xf8c   :  { %v1510_v21 = vadd.f32 %v1501_v19, %v4667_v1 }
 0xf8d   :  { %v4761_v15 = vadd.f32 %v1515_v16, %v1511_v20 }
 0xf8e   :  { %v4763_v22 = vadd.f32 %v1515_v16, %v1510_v21 }
 0xf8f   :  { %v1523_v23 = vsel %vm168_vm2, %v4761_v15, 0.0 }
 0xf90   :  { %1524 = vadd.xlane.f32.xlu0 %v1523_v23  ;;  %v1520_v24 = vsel %vm164_vm1, %v4763_v22, 0.0 }
 0xf91   :  { %1521 = vadd.xlane.f32.xlu1 %v1520_v24 }
0x101d   :  { %v1525_v63 = vpop.xlane.xlu0 %1524 }
0x101e   :  { %v1527_v46 = vmul.f32 0.03125, %v1525_v63  ;;  %v1522_v61 = vpop.xlane.xlu1 %1521 }
0x101f   :  { %v1526_v26 = vmul.f32 0.03125, %v1522_v61 }
0x1020   :  { %v1529_v9 = vsub.f32 %v4761_v15, %v1527_v46 }
0x1021   :  { %v1528_v1 = vsub.f32 %v4763_v22, %v1526_v26 }
0x1022   :  { %v1531_v53 = vmul.f32 %v1529_v9, %v1529_v9 }
0x1023   :  { %v1530_v31 = vmul.f32 %v1528_v1, %v1528_v1 }
0x1024   :  { %v1535_v32 = vsel %vm168_vm2, %v1531_v53, 0.0 }
0x1025   :  { %1536 = vadd.xlane.f32.xlu0 %v1535_v32  ;;  %v1532_v33 = vsel %vm164_vm1, %v1530_v31, 0.0 }
0x1026   :  { %1533 = vadd.xlane.f32.xlu1 %v1532_v33 }
0x10b2   :  { %v1537_v42 = vpop.xlane.xlu0 %1536 }
0x10b3   :  { %v1539_v51 = vmul.f32 0.03125, %v1537_v42  ;;  %v1534_v44 = vpop.xlane.xlu1 %1533 }
0x10b4   :  { %v1538_v27 = vmul.f32 0.03125, %v1534_v44 }
0x10b5   :  { %v1541_v28 = vadd.f32 1e-05, %v1539_v51 }
0x10b6   :  { %v1540_v45 = vadd.f32 1e-05, %v1538_v27 }
0x10b7   :  { %4121 = vrsqrt.f32 %v1541_v28 }
0x10b8   :  { %4123 = vrsqrt.f32 %v1540_v45 }
0x10c1   :  { %v4122_v54 = vpop.eup %4121 }
0x10c2   :  { %v4124_v56 = vpop.eup %4123  ;;  %v1545_v58 = vmul.f32 %v4122_v54, %v1529_v9 }
0x10c3   :  { %v1544_v59 = vmul.f32 %v4124_v56, %v1528_v1 }
0x10c4   :  { %v1551_v0 = vmul.f32 %v1549_v49, %v1545_v58 }
0x10c5   :  { %v1550_v10 = vmul.f32 %v1549_v49, %v1544_v59 }
0x10c6   :  { %v1557_v16 = vadd.f32 %v1555_v62, %v1551_v0 }
0x10c7   :  { %v1556_v12 = vadd.f32 %v1555_v62, %v1550_v10 }
0x10c9   :  { %3573 = vmatprep.mubr.msk.f32.mxu0 %vm164_vm1, %v1556_v12 }
0x10ca   :  { %3574 = vmatmul.mubr.msk.f32.vlgmr.msra.gmra.mrb[8].mxu0 %vm164_vm1, %v1557_v16 }
0x119d   :  { %v3575_v20 = vpop.f32.mrb[8].mxu0 }
0x119e   :  { %v4798_v19 = vadd.f32 %v3575_v20, %v1566_v17  ;;  %v1639_v21 = vpop.f32.mrb[9].mxu0 }
0x119f   :  { %v4800_v23 = vadd.f32 %v1639_v21, %v1566_v17 }
0x11a0   :  { %v1649_v24 = vmul.f32 %v4798_v19, %v4453_v60  ;;  %v1860_v26 = vmul.f32 %v4798_v19, %v4499_v25  ;;  %v2058_v53 = vmul.f32 %v4798_v19, %v4558_v2 }
0x11a1   :  { %3580 = vmatprep.mubr.msk.f32.mxu0 %vm164_vm1, %v4800_v23  ;;  %3608 = vmatprep.mubr.msk.f32.mxu1 %vm164_vm1, %v4800_v23  ;;  %v1648_v63 = vmul.f32 %v4800_v23, %v4453_v60  ;;  %v1859_v61 = vmul.f32 %v4800_v23, %v4499_v25  ;;  %v2057_v1 = vmul.f32 %v4800_v23, %v4558_v2 }
0x11a2   :  { %v4053_v62 = vpack.i.bf16 %v4798_v19, %v4800_v23 }
0x11a3   :  { %v4048_v46 = vpack.i.bf16 %v1649_v24, %v1648_v63  ;;  %v4058_v9 = vpack.i.bf16 %v1860_v26, %v1859_v61  ;;  %v4063_v31 = vpack.i.bf16 %v2058_v53, %v2057_v1 }
0x11a5   :  { %4049 = vrot.lane.b32.xlu1 %v4048_v46, %s4199_s28 }
0x11a9   :  { %4059 = vrot.lane.b32.xlu1 %v4058_v9, %s4199_s28 }
0x11ad   :  { %4064 = vrot.lane.b32.xlu1 %v4063_v31, %s4199_s28 }
0x1217   :  { %v4050_v60 = vpop.permute.xlu1 %4049 }
0x1218   :  { %v4052_v32 = vunpack.i.h.bf16 %v4050_v60  ;;  %v4051_v33 = vunpack.i.l.bf16 %v4050_v60 }
0x121a   :  { %v3889_v30 = vpack.c.bf16 %v4052_v32, %v4051_v33 }
0x121b   :  { %v4060_v34 = vpop.permute.xlu1 %4059 }
0x121c   :  { %3891 = vmatprep.subr.msk.bf16.mxu0 %vm4475_vm7, %v3889_v30  ;;  %v4062_v21 = vunpack.i.h.bf16 %v4060_v34  ;;  %v4061_v63 = vunpack.i.l.bf16 %v4060_v34 }
0x121d   :  { %3894 = vmatpush3.bf16.xpose.msk.msra.mxu0 %vm4475_vm7, %v3889_v30 }
0x121e   :  { %v3901_v9 = vpack.c.bf16 %v4062_v21, %v4061_v63 }
0x121f   :  { %v4065_v25 = vpop.permute.xlu1 %4064 }
0x1220   :  { %v4067_v37 = vunpack.i.h.bf16 %v4065_v25  ;;  %v4066_v35 = vunpack.i.l.bf16 %v4065_v25 }
0x1222   :  { %v3913_v2 = vpack.c.bf16 %v4067_v37, %v4066_v35 }
0x1224   :  { %3581 = vmatmul.mubr.msk.f32.vlgmr.msra.gmra.mrb[10].mxu0 %vm164_vm1, %v4798_v19  ;;  %3915 = vmatprep.subr.msk.bf16.mxu1 %vm4475_vm7, %v3913_v2 }
0x1225   :  { %3918 = vmatpush3.bf16.xpose.msk.msra.mxu1 %vm4475_vm7, %v3913_v2 }
0x122c   :  { %3609 = vmatmul.mubr.msk.f32.vlgmr.msra.gmra.mrb[20].mxu1 %vm164_vm1, %v4798_v19 }
0x12f7   :  { %v3582_v41 = vpop.f32.mrb[10].mxu0 }
0x12f8   :  { %v1742_v50 = vmul.f32 0.35355338, %v3582_v41  ;;  %v1732_v42 = vpop.f32.mrb[11].mxu0 }
0x12f9   :  { %v1741_v51 = vmul.f32 0.35355338, %v1732_v42 }
0x12fa   :  { %v1744_v44 = vadd.f32 %v1742_v50, %v4488_v14 }
0x12fb   :  { %v1743_v28 = vadd.f32 %v1741_v51, %v4493_v18  ;;  %v2255_v51 = vmul.f32 %v4800_v23, %v4595_v43 }
0x12fc   :  { %v1748_v27 = vsel %vm462_vm8, %v1744_v44, -inf }
0x12fd   :  { %1749 = vmax.xlane.f32.xlu0 %v1748_v27  ;;  %v1745_v54 = vsel %vm458_vm9, %v1743_v28, -inf }
0x12ff   :  { %v3610_v45 = vpop.f32.mrb[20].mxu1 }
0x1300   :  { %v2135_v49 = vpop.f32.mrb[21].mxu1  ;;  %v2145_v33 = vmul.f32 0.35355338, %v3610_v45 }
0x1301   :  { %v2144_v56 = vmul.f32 0.35355338, %v2135_v49  ;;  %1746 = vmax.xlane.f32.xlu0 %v1745_v54 }
0x1302   :  { %v2147_v41 = vadd.f32 %v2145_v33, %v4488_v14 }
0x1303   :  { %v2146_v58 = vadd.f32 %v2144_v56, %v4493_v18 }
0x1304   :  { %v2151_v42 = vsel %vm462_vm8, %v2147_v41, -inf }
0x1305   :  { %v2148_v59 = vsel %vm458_vm9, %v2146_v58, -inf }
0x1306   :  { %2149 = vmax.xlane.f32.xlu1 %v2148_v59 }
0x1317   :  { %4054 = vrot.lane.b32.xlu0 %v4053_v62, %s4200_s0 }
0x138a   :  { %v1750_v0 = vpop.xlane.xlu0 %1749 }
0x138b   :  { %v1752_v10 = vsub.f32 %v1744_v44, %v1750_v0  ;;  %v2256_v44 = vmul.f32 %v4798_v19, %v4595_v43 }
0x138d   :  { %v1755_v17 = vmul.f32 1.442695, %v1752_v10  ;;  %v4068_v27 = vpack.i.bf16 %v2256_v44, %v2255_v51 }
0x138e   :  { %v1747_v12 = vpop.xlane.xlu0 %1746 }
0x138f   :  { %v1751_v16 = vsub.f32 %v1743_v28, %v1747_v12 }
0x1391   :  { %v1753_v20 = vmul.f32 1.442695, %v1751_v16 }
0x1392   :  { %v4055_v24 = vpop.permute.xlu0 %4054 }
0x1393   :  { %4125 = vpow2.f32 %v1753_v20  ;;  %v4057_v46 = vunpack.i.h.bf16 %v4055_v24  ;;  %v4056_v61 = vunpack.i.l.bf16 %v4055_v24 }
0x1394   :  { %4127 = vpow2.f32 %v1755_v17 }
0x1395   :  { %v4842_v26 = vpack.c.bf16 %v4057_v46, %v4056_v61 }
0x1397   :  { %3897 = vmatprep.subr.msk.bf16.mxu0 %vm4516_vm15, %v4842_v26  ;;  %3933 = vmatprep.subr.msk.bf16.mxu1 %vm4516_vm15, %v4842_v26 }
0x1398   :  { %3900 = vmatpush3.bf16.msk.msra.mxu0 %vm4516_vm15, %v4842_v26  ;;  %3936 = vmatpush3.bf16.msk.msra.mxu1 %vm4516_vm15, %v4842_v26 }
0x1399   :  { %3903 = vmatprep.subr.msk.bf16.mxu0 %vm4475_vm7, %v3901_v9 }
0x139d   :  { %v4858_v1 = vpop.eup %4125 }
0x139e   :  { %v4860_v53 = vpop.eup %4127  ;;  %3587 = vmatprep.mubr.msk.f32.mxu0 %vm458_vm9, %v4858_v1 }
0x139f   :  { %3588 = vmatmul.mubr.msk.f32.vlgmr.msra.gmra.mrb[12].mxu0 %vm458_vm9, %v4860_v53 }
0x13a0   :  { %3594 = vmatprep.mubr.msk.f32.mxu0 %vm164_vm1, %v4800_v23 }
0x13a1   :  { %3906 = vmatpush3.bf16.xpose.msk.msra.mxu0 %vm4475_vm7, %v3901_v9 }
0x13a2   :  { %3909 = vmatprep.subr.msk.bf16.mxu0 %vm4516_vm15, %v4842_v26 }
0x13a8   :  { %3595 = vmatmul.mubr.msk.f32.vlgmr.msra.gmra.mrb[14].mxu0 %vm164_vm1, %v4798_v19 }
0x13a9   :  { %3912 = vmatpush3.bf16.msk.msra.mxu0 %vm4516_vm15, %v4842_v26 }
0x13aa   :  { %3921 = vmatprep.subr.msk.bf16.mxu0 %vm4516_vm15, %v4842_v26 }
0x1472   :  { %v4881_v31 = vpop.f32.mrb[12].mxu0 }
0x1473   :  { %v4883_v60 = vpop.f32.mrb[13].mxu0 }
0x147b   :  { %v3596_v32 = vpop.f32.mrb[14].mxu0 }
0x147c   :  { %v1947_v30 = vmul.f32 0.35355338, %v3596_v32  ;;  %v1937_v34 = vpop.f32.mrb[15].mxu0 }
0x147d   :  { %v1946_v25 = vmul.f32 0.35355338, %v1937_v34 }
0x147e   :  { %v1949_v37 = vadd.f32 %v1947_v30, %v4488_v14 }
0x147f   :  { %v1948_v35 = vadd.f32 %v1946_v25, %v4493_v18  ;;  %v2150_v18 = vpop.xlane.xlu1 %2149 }
0x1480   :  { %v1953_v2 = vsel %vm462_vm8, %v1949_v37, -inf  ;;  %v2154_v28 = vsub.f32 %v2146_v58, %v2150_v18 }
0x1481   :  { %1954 = vmax.xlane.f32.xlu0 %v1953_v2  ;;  %v1950_v50 = vsel %vm458_vm9, %v1948_v35, -inf  ;;  %v1757_v2 = vsel %vm458_vm9, %v4858_v1, 0.0 }
0x1482   :  { %1951 = vmax.xlane.f32.xlu1 %v1950_v50  ;;  %v2156_v59 = vmul.f32 1.442695, %v2154_v28  ;;  %v1760_v50 = vsel %vm462_vm8, %v4860_v53, 0.0 }
0x1485   :  { %2152 = vmax.xlane.f32.xlu0 %v2151_v42 }
0x1493   :  { %4069 = vrot.lane.b32.xlu1 %v4068_v27, %s4199_s28 }
0x150e   :  { %v1955_v45 = vpop.xlane.xlu0 %1954 }
0x150f   :  { %v1957_v14 = vsub.f32 %v1949_v37, %v1955_v45  ;;  %v1952_v49 = vpop.xlane.xlu1 %1951 }
0x1510   :  { %v1956_v54 = vsub.f32 %v1948_v35, %v1952_v49 }
0x1511   :  { %v1960_v56 = vmul.f32 1.442695, %v1957_v14 }
0x1512   :  { %v1958_v62 = vmul.f32 1.442695, %v1956_v54  ;;  %v2153_v0 = vpop.xlane.xlu0 %2152 }
0x1513   :  { %4129 = vpow2.f32 %v1960_v56  ;;  %v2155_v10 = vsub.f32 %v2147_v41, %v2153_v0  ;;  %v4070_v43 = vpop.permute.xlu1 %4069 }
0x1514   :  { %4131 = vpow2.f32 %v1958_v62  ;;  %v4072_v16 = vunpack.i.h.bf16 %v4070_v43  ;;  %v4071_v17 = vunpack.i.l.bf16 %v4070_v43 }
0x1515   :  { %v2158_v12 = vmul.f32 1.442695, %v2155_v10  ;;  %4133 = vpow2.f32 %v2156_v59 }
0x1516   :  { %v3925_v63 = vpack.c.bf16 %v4072_v16, %v4071_v17 }
0x1517   :  { %4135 = vpow2.f32 %v2158_v12 }
0x151d   :  { %v4130_v20 = vpop.eup %4129 }
0x151e   :  { %v4132_v21 = vpop.eup %4131  ;;  %v1965_v58 = vsel %vm462_vm8, %v4130_v20, 0.0 }
0x151f   :  { %1966 = vadd.xlane.f32.xlu1 %v1965_v58  ;;  %3601 = vmatprep.mubr.msk.f32.mxu0 %vm458_vm9, %v4132_v21  ;;  %v4134_v24 = vpop.eup %4133  ;;  %v1962_v41 = vsel %vm458_vm9, %v4132_v21, 0.0 }
0x1520   :  { %3602 = vmatmul.mubr.msk.f32.vlgmr.msra.gmra.mrb[16].mxu0 %vm458_vm9, %v4130_v20  ;;  %v2160_v42 = vsel %vm458_vm9, %v4134_v24, 0.0 }
0x1521   :  { %3924 = vmatpush3.bf16.msk.msra.mxu0 %vm4516_vm15, %v4842_v26  ;;  %3615 = vmatprep.mubr.msk.f32.mxu0 %vm458_vm9, %v4134_v24  ;;  %v4136_v46 = vpop.eup %4135 }
0x1522   :  { %3927 = vmatprep.subr.msk.bf16.mxu0 %vm4475_vm7, %v3925_v63  ;;  %v2163_v51 = vsel %vm462_vm8, %v4136_v46, 0.0 }
0x1524   :  { %3616 = vmatmul.mubr.msk.f32.vlgmr.msra.gmra.mrb[18].mxu0 %vm458_vm9, %v4136_v46 }
0x1525   :  { %3622 = vmatprep.mubr.msk.f32.mxu0 %vm164_vm1, %v4800_v23  ;;  %v4169_v23 = vld [vmem:[%s5163_s3] sm:$0xff] }
0x152a   :  { %3930 = vmatpush3.bf16.xpose.msk.msra.mxu0 %vm4475_vm7, %v3925_v63 }
0x1531   :  { %3623 = vmatmul.mubr.msk.f32.vlgmr.msra.gmra.mrb[20].mxu0 %vm164_vm1, %v4798_v19  ;;  %v4170_v19 = vld [vmem:[%s5163_s3 + $0x8] sm:$0x3] }
0x15ac   :  { %v1967_v49 = vpop.xlane.xlu1 %1966 }
0x15f3   :  { %v4912_v61 = vpop.f32.mrb[16].mxu0 }
0x15f4   :  { %v2042_v47 = vpop.f32.mrb[17].mxu0 }
0x15f7   :  { %v4914_v26 = vpop.f32.mrb[18].mxu0 }
0x15f8   :  { %v4916_v9 = vpop.f32.mrb[19].mxu0 }
0x1604   :  { %v3624_v32 = vpop.f32.mrb[20].mxu0 }
0x1605   :  { %v2333_v33 = vpop.f32.mrb[21].mxu0  ;;  %v2343_v30 = vmul.f32 0.35355338, %v3624_v32 }
0x1606   :  { %v2342_v34 = vmul.f32 0.35355338, %v2333_v33 }
0x1607   :  { %v2345_v37 = vadd.f32 %v4170_v19, %v2343_v30 }
0x1608   :  { %v2344_v11 = vadd.f32 %v4169_v23, %v2342_v34 }
0x1609   :  { %v2349_v35 = vsel %vm462_vm8, %v2345_v37, -inf }
0x160a   :  { %v2346_v25 = vsel %vm458_vm9, %v2344_v11, -inf }
0x160b   :  { %2347 = vmax.xlane.f32.xlu0 %v2346_v25 }
0x160f   :  { %2350 = vmax.xlane.f32.xlu0 %v2349_v35 }
0x1613   :  { %1758 = vadd.xlane.f32.xlu0 %v1757_v2  ;;  %v3252_v2 = vld [vmem:[%s5166_s6 + $0x38] sm:$0xff] }
0x1617   :  { %1963 = vadd.xlane.f32.xlu0 %v1962_v41 }
0x161b   :  { %1761 = vadd.xlane.f32.xlu0 %v1760_v50 }
0x161f   :  { %2161 = vadd.xlane.f32.xlu0 %v2160_v42 }
0x1623   :  { %2164 = vadd.xlane.f32.xlu0 %v2163_v51 }
0x1698   :  { %v2348_v44 = vpop.xlane.xlu0 %2347 }
0x1699   :  { %v2352_v27 = vsub.f32 %v2344_v11, %v2348_v44 }
0x169b   :  { %v2354_v18 = vmul.f32 1.442695, %v2352_v27 }
0x169c   :  { %v2351_v28 = vpop.xlane.xlu0 %2350 }
0x169d   :  { %4137 = vpow2.f32 %v2354_v18  ;;  %v2353_v1 = vsub.f32 %v2345_v37, %v2351_v28 }
0x169f   :  { %v2356_v45 = vmul.f32 1.442695, %v2353_v1 }
0x16a0   :  { %v1759_v14 = vpop.xlane.xlu0 %1758 }
0x16a1   :  { %4139 = vpow2.f32 %v2356_v45 }
0x16a2   :  { %4141 = vrcp.f32 %v1759_v14 }
0x16a4   :  { %v1964_v54 = vpop.xlane.xlu0 %1963 }
0x16a5   :  { %4143 = vrcp.f32 %v1964_v54  ;;  %v2544_v54 = vrot.slane %v4788_v48, %v1270_v55 }
0x16a6   :  { %4145 = vrcp.f32 %v1967_v49 }
0x16a7   :  { %v4138_v53 = vpop.eup %4137 }
0x16a8   :  { %3629 = vmatprep.mubr.msk.f32.mxu1 %vm458_vm9, %v4138_v53  ;;  %v1762_v56 = vpop.xlane.xlu0 %1761  ;;  %v2358_v59 = vsel %vm458_vm9, %v4138_v53, 0.0 }
0x16a9   :  { %4147 = vrcp.f32 %v1762_v56  ;;  %2359 = vadd.xlane.f32.xlu0 %v2358_v59 }
0x16ab   :  { %v4140_v62 = vpop.eup %4139 }
0x16ac   :  { %v4142_v0 = vpop.eup %4141  ;;  %3630 = vmatmul.mubr.msk.f32.vlgmr.msra.gmra.mrb[22].mxu1 %vm458_vm9, %v4140_v62  ;;  %v2162_v10 = vpop.xlane.xlu0 %2161  ;;  %v2361_v12 = vsel %vm462_vm8, %v4140_v62, 0.0 }
0x16ad   :  { %4149 = vrcp.f32 %v2162_v10  ;;  %2362 = vadd.xlane.f32.xlu0 %v2361_v12  ;;  %v1853_v43 = vmul.f32 %v4142_v0, %v4433_v39 }
0x16af   :  { %v4144_v16 = vpop.eup %4143  ;;  %v1855_v58 = vmul.f32 %v1853_v43, %v4883_v60  ;;  %v3249_v60 = vld [vmem:[%s5166_s6 + $0x20] sm:$0xff] }
0x16b0   :  { %v2165_v17 = vpop.xlane.xlu0 %2164  ;;  %v2051_v20 = vmul.f32 %v4144_v16, %v4469_v5  ;;  %v4146_v21 = vpop.eup %4145 }
0x16b1   :  { %4151 = vrcp.f32 %v2165_v17  ;;  %v2052_v46 = vmul.f32 %v4146_v21, %v4469_v5 }
0x16b2   :  { %v2053_v24 = vmul.f32 %v2051_v20, %v2042_v47 }
0x16b3   :  { %v4148_v63 = vpop.eup %4147  ;;  %v2054_v30 = vmul.f32 %v4912_v61, %v2052_v46 }
0x16b4   :  { %v1854_v32 = vmul.f32 %v4148_v63, %v4433_v39  ;;  %v2055_v33 = vadd.f32 %v2053_v24, %v1855_v58  ;;  %v3250_v39 = vld [vmem:[%s5166_s6 + $0x28] sm:$0xff]  ;;  %v3255_v24 = vld [vmem:[%s5167_s7 + $0x20] sm:$0xff] }
0x16b5   :  { %v3937_v5 = vpack.c.bf16 %v3250_v39, %v3249_v60  ;;  %v3256_v63 = vld [vmem:[%s5167_s7 + $0x28] sm:$0xff]  ;;  %v2576_v60 = vrot.slane %v4788_v48, %v4692_v36 }
0x16b6   :  { %v1856_v34 = vmul.f32 %v4881_v31, %v1854_v32  ;;  %v3945_v46 = vpack.c.bf16 %v3256_v63, %v3255_v24  ;;  %v3257_v32 = vld [vmem:[%s5167_s7 + $0x30] sm:$0xff] }
0x16b7   :  { %v4150_v23 = vpop.eup %4149  ;;  %3938 = vmatprep.subr.bf16.mxu1 %v3937_v5 }
0x16b8   :  { %v2056_v11 = vadd.f32 %v2054_v30, %v1856_v34  ;;  %v2249_v25 = vmul.f32 %v4150_v23, %v4509_v29  ;;  %3940 = vmatpush3.bf16.msra.mxu1 %v3937_v5  ;;  %3946 = vmatprep.subr.bf16.mxu0 %v3945_v46 }
0x16b9   :  { %3948 = vmatpush3.bf16.msra.mxu0 %v3945_v46 }
0x16ba   :  { %v2251_v19 = vmul.f32 %v2249_v25, %v4916_v9  ;;  %v3251_v9 = vld [vmem:[%s5166_s6 + $0x30] sm:$0xff] }
0x16bb   :  { %v4152_v37 = vpop.eup %4151  ;;  %v3941_v41 = vpack.c.bf16 %v3252_v2, %v3251_v9 }
0x16bc   :  { %v2250_v61 = vmul.f32 %v4152_v37, %v4509_v29  ;;  %v2253_v47 = vadd.f32 %v2251_v19, %v2055_v33  ;;  %v3258_v33 = vld [vmem:[%s5167_s7 + $0x38] sm:$0xff] }
0x16bd   :  { %3942 = vmatprep.subr.bf16.mxu1 %v3941_v41  ;;  %v3949_v30 = vpack.c.bf16 %v3258_v33, %v3257_v32 }
0x16be   :  { %v2252_v31 = vmul.f32 %v4914_v26, %v2250_v61  ;;  %3944 = vmatpush3.bf16.msra.mxu1 %v3941_v41  ;;  %v2582_v61 = vrot.slane %v4788_v48, %v4695_v40 }
0x16bf   :  { %3950 = vmatprep.subr.bf16.mxu0 %v3949_v30 }
0x16c0   :  { %v2254_v35 = vadd.f32 %v2252_v31, %v2056_v11  ;;  %3952 = vmatpush3.bf16.msra.mxu0 %v3949_v30 }
0x16c1   :  { %3985 = vmatprep.subr.bf16.mxu0 %v4196_v3 }
0x1736   :  { %v2360_v50 = vpop.xlane.xlu0 %2359 }
0x173a   :  { %v2363_v42 = vpop.xlane.xlu0 %2362 }
0x173b   :  { %4153 = vrcp.f32 %v2363_v42  ;;  %v3262_v42 = vld [vmem:[%s5168_s8 + $0x88] sm:$0xff] }
0x173c   :  { %4155 = vrcp.f32 %v2360_v50  ;;  %v3261_v50 = vld [vmem:[%s5168_s8 + $0x80] sm:$0xff] }
0x1745   :  { %v4154_v29 = vpop.eup %4153 }
0x1746   :  { %v4156_v51 = vpop.eup %4155  ;;  %v2448_v26 = vmul.f32 %v4154_v29, %v4561_v7  ;;  %v3953_v29 = vpack.c.bf16 %v3262_v42, %v3261_v50 }
0x1747   :  { %v2447_v27 = vmul.f32 %v4156_v51, %v4561_v7  ;;  %v3263_v51 = vld [vmem:[%s5168_s8 + $0x90] sm:$0xff] }
0x1748   :  { %3954 = vmatprep.subr.bf16.mxu1 %v3953_v29 }
0x177f   :  { %v3631_v44 = vpop.f32.mrb[22].mxu1 }
0x1780   :  { %v2450_v18 = vmul.f32 %v3631_v44, %v2448_v26  ;;  %v2438_v28 = vpop.f32.mrb[23].mxu1  ;;  %v3264_v26 = vld [vmem:[%s5168_s8 + $0x98] sm:$0xff] }
0x1781   :  { %v2449_v1 = vmul.f32 %v2447_v27, %v2438_v28  ;;  %v3957_v44 = vpack.c.bf16 %v3264_v26, %v3263_v51  ;;  %v3265_v27 = vld [vmem:[%s5168_s8 + $0xa0] sm:$0xff] }
0x1782   :  { %v2452_v45 = vadd.f32 %v2450_v18, %v2254_v35  ;;  %v3266_v18 = vld [vmem:[%s5168_s8 + $0xa8] sm:$0xff] }
0x1783   :  { %v2451_v14 = vadd.f32 %v2449_v1, %v2253_v47  ;;  %v3961_v28 = vpack.c.bf16 %v3266_v18, %v3265_v27  ;;  %v3267_v1 = vld [vmem:[%s5168_s8 + $0xb0] sm:$0xff] }
0x1785   :  { %3640 = vmatprep.mubr.msk.f32.mxu1 %vm164_vm1, %v2451_v14 }
0x1786   :  { %3641 = vmatmul.mubr.msk.f32.vlgmr.msra.gmra.mrb[24].mxu1 %vm164_vm1, %v2452_v45  ;;  %v3268_v45 = vld [vmem:[%s5168_s8 + $0xb8] sm:$0xff] }
0x1787   :  { %3956 = vmatpush3.bf16.msra.mxu1 %v3953_v29  ;;  %v3965_v14 = vpack.c.bf16 %v3268_v45, %v3267_v1  ;;  %v4171_v45 = vld [vmem:[%s5164_s4] sm:$0xf] }
0x1788   :  { %3958 = vmatprep.subr.bf16.mxu1 %v3957_v44 }
0x178b   :  { %3960 = vmatpush3.bf16.msra.mxu1 %v3957_v44  ;;  %v2816_v44 = vld [vmem:[%s5170_s10 + $0x18] sm:$0xff] }
0x178c   :  { %3962 = vmatprep.subr.bf16.mxu1 %v3961_v28 }
0x178f   :  { %3964 = vmatpush3.bf16.msra.mxu1 %v3961_v28 }
0x1790   :  { %3966 = vmatprep.subr.bf16.mxu1 %v3965_v14 }
0x1793   :  { %3968 = vmatpush3.bf16.msra.mxu1 %v3965_v14  ;;  %v2806_v14 = vrot.slane %v4171_v45, %v4692_v36 }
0x1859   :  { %v3642_v49 = vpop.f32.mrb[24].mxu1 }
0x185a   :  { %v2530_v53 = vpop.f32.mrb[25].mxu1  ;;  %v2540_v56 = vadd.f32 %v3642_v49, %v4761_v15  ;;  %v3269_v49 = vld [vmem:[%s5168_s8 + $0xc0] sm:$0xff] }
0x185b   :  { %v2539_v59 = vadd.f32 %v2530_v53, %v4763_v22  ;;  %v3271_v53 = vld [vmem:[%s5168_s8 + $0xd0] sm:$0xff] }
0x185c   :  { %v2546_v0 = vadd.f32 %v2544_v54, %v2540_v56 }
0x185d   :  { %v4969_v7 = vadd.f32 %v2544_v54, %v2539_v59  ;;  %v3270_v54 = vld [vmem:[%s5168_s8 + $0xc8] sm:$0xff]  ;;  %v3272_v59 = vld [vmem:[%s5168_s8 + $0xd8] sm:$0xff] }
0x185e   :  { %v2550_v10 = vsel %vm168_vm2, %v2546_v0, 0.0  ;;  %v3969_v56 = vpack.c.bf16 %v3270_v54, %v3269_v49 }
0x185f   :  { %v2547_v62 = vsel %vm164_vm1, %v4969_v7, 0.0 }
0x1860   :  { %2548 = vadd.xlane.f32.xlu0 %v2547_v62  ;;  %v3973_v62 = vpack.c.bf16 %v3272_v59, %v3271_v53  ;;  %3970 = vmatprep.subr.bf16.mxu1 %v3969_v56  ;;  %v2811_v53 = vrot.slane %v4171_v45, %v4695_v40 }
0x1861   :  { %3972 = vmatpush3.bf16.msra.mxu1 %v3969_v56 }
0x1862   :  { %3974 = vmatprep.subr.bf16.mxu1 %v3973_v62 }
0x1864   :  { %2551 = vadd.xlane.f32.xlu0 %v2550_v10  ;;  %v3274_v10 = vld [vmem:[%s5168_s8 + $0xe8] sm:$0xff] }
0x1865   :  { %3976 = vmatpush3.bf16.msra.mxu1 %v3973_v62 }
0x18ed   :  { %v2549_v12 = vpop.xlane.xlu0 %2548 }
0x18ee   :  { %v2553_v43 = vmul.f32 0.03125, %v2549_v12 }
0x18f0   :  { %v2555_v16 = vsub.f32 %v4969_v7, %v2553_v43  ;;  %v3275_v43 = vld [vmem:[%s5168_s8 + $0xf0] sm:$0xff] }
0x18f1   :  { %v2552_v55 = vpop.xlane.xlu0 %2551 }
0x18f2   :  { %v2554_v17 = vmul.f32 0.03125, %v2552_v55  ;;  %v2557_v20 = vmul.f32 %v2555_v16, %v2555_v16 }
0x18f4   :  { %v2556_v15 = vsub.f32 %v2546_v0, %v2554_v17  ;;  %v2559_v22 = vsel %vm164_vm1, %v2557_v20, 0.0  ;;  %v3273_v0 = vld [vmem:[%s5168_s8 + $0xe0] sm:$0xff]  ;;  %v2593_v17 = vrot.slane %v4788_v48, %v1318_v52 }
0x18f5   :  { %2560 = vadd.xlane.f32.xlu0 %v2559_v22  ;;  %v3977_v12 = vpack.c.bf16 %v3274_v10, %v3273_v0 }
0x18f6   :  { %v2558_v21 = vmul.f32 %v2556_v15, %v2556_v15 }
0x18f7   :  { %3978 = vmatprep.subr.bf16.mxu1 %v3977_v12 }
0x18f8   :  { %v2562_v58 = vsel %vm168_vm2, %v2558_v21, 0.0  ;;  %3980 = vmatpush3.bf16.msra.mxu1 %v3977_v12 }
0x18f9   :  { %2563 = vadd.xlane.f32.xlu0 %v2562_v58 }
0x1982   :  { %v2561_v34 = vpop.xlane.xlu0 %2560 }
0x1983   :  { %v2565_v23 = vmul.f32 0.03125, %v2561_v34 }
0x1985   :  { %v2567_v11 = vadd.f32 1e-05, %v2565_v23 }
0x1986   :  { %v2564_v25 = vpop.xlane.xlu0 %2563 }
0x1987   :  { %4157 = vrsqrt.f32 %v2567_v11  ;;  %v2566_v19 = vmul.f32 0.03125, %v2564_v25 }
0x1989   :  { %v2568_v37 = vadd.f32 1e-05, %v2566_v19 }
0x198b   :  { %4159 = vrsqrt.f32 %v2568_v37 }
0x1991   :  { %v4158_v39 = vpop.eup %4157 }
0x1992   :  { %v2571_v5 = vmul.f32 %v4158_v39, %v2555_v16  ;;  %v3276_v16 = vld [vmem:[%s5168_s8 + $0xf8] sm:$0xff] }
0x1993   :  { %v3981_v55 = vpack.c.bf16 %v3276_v16, %v3275_v43  ;;  %v2898_v43 = vld [vmem:[%s5171_s11] sm:$0xff]  ;;  %v2899_v16 = vld [vmem:[%s5171_s11 + $0x8] sm:$0xff] }
0x1994   :  { %v2577_v47 = vmul.f32 %v2576_v60, %v2571_v5 }
0x1995   :  { %v4160_v31 = vpop.eup %4159  ;;  %3982 = vmatprep.subr.bf16.mxu1 %v3981_v55 }
0x1996   :  { %v2572_v35 = vmul.f32 %v4160_v31, %v2556_v15  ;;  %v2583_v9 = vadd.f32 %v2582_v61, %v2577_v47  ;;  %3984 = vmatpush3.bf16.msra.mxu1 %v3981_v55  ;;  %v2788_v31 = vrot.slane %v4788_v48, %v1514_v13  ;;  %v2814_v13 = vld [vmem:[%s5170_s10 + $0x8] sm:$0xff]  ;;  %v3992_v55 = vpack.c.bf16 %v2899_v16, %v2898_v43 }
0x1997   :  { %4009 = vmatprep.subr.bf16.mxu1 %v4196_v3  ;;  %v3986_v48 = vpack.c.bf16 %v2814_v13, %v2813_v4 }
0x1998   :  { %v2578_v2 = vmul.f32 %v2576_v60, %v2572_v35  ;;  %3651 = vmatprep.mubr.msk.f32.mxu0 %vm164_vm1, %v2583_v9 }
0x199a   :  { %v2584_v41 = vadd.f32 %v2582_v61, %v2578_v2 }
0x199c   :  { %3652 = vmatmul.mubr.msk.f32.vlgmr.msra.gmra.mrb[22].mxu0 %vm164_vm1, %v2584_v41 }
0x199d   :  { %3987 = vmatpush3.bf16.msra.mxu0 %v3986_v48  ;;  %3697 = vmatprep.mubr.msk.f32.mxu0 %vm4202_vm6, %v4197_v38 }
0x199e   :  { %3988 = vmatprep.subr.bf16.mxu0 %v4196_v3 }
0x1a6f   :  { %v3653_v20 = vpop.f32.mrb[22].mxu0 }
0x1a70   :  { %v2672_v15 = vadd.f32 %v3653_v20, %v2593_v17  ;;  %v2666_v22 = vpop.f32.mrb[23].mxu0  ;;  %v2901_v20 = vld [vmem:[%s5171_s11 + $0x18] sm:$0xff] }
0x1a71   :  { %v2667_v21 = vadd.f32 %v2666_v22, %v2593_v17  ;;  %v2900_v17 = vld [vmem:[%s5171_s11 + $0x10] sm:$0xff] }
0x1a72   :  { %v2676_v58 = vmul.f32 %v2672_v15, %v2672_v15 }
0x1a73   :  { %v2675_v24 = vmul.f32 %v2667_v21, %v2667_v21 }
0x1a74   :  { %v2678_v63 = vmul.f32 %v2676_v58, %v2672_v15  ;;  %v2986_v58 = vld [vmem:[%s5172_s12] sm:$0xff] }
0x1a75   :  { %v2677_v46 = vmul.f32 %v2675_v24, %v2667_v21  ;;  %v2987_v24 = vld [vmem:[%s5172_s12 + $0x8] sm:$0xff] }
0x1a76   :  { %v2680_v32 = vmul.f32 0.044715, %v2678_v63 }
0x1a77   :  { %v2679_v33 = vmul.f32 0.044715, %v2677_v46  ;;  %v3998_v46 = vpack.c.bf16 %v2987_v24, %v2986_v58 }
0x1a78   :  { %v2682_v30 = vadd.f32 %v2680_v32, %v2672_v15 }
0x1a79   :  { %v2681_v34 = vadd.f32 %v2679_v33, %v2667_v21  ;;  %v2988_v33 = vld [vmem:[%s5172_s12 + $0x10] sm:$0xff] }
0x1a7a   :  { %v2684_v23 = vmul.f32 0.7978846, %v2682_v30  ;;  %v2989_v30 = vld [vmem:[%s5172_s12 + $0x18] sm:$0xff] }
0x1a7b   :  { %v2683_v11 = vmul.f32 0.7978846, %v2681_v34  ;;  %v4001_v34 = vpack.c.bf16 %v2989_v30, %v2988_v33 }
0x1a7c   :  { %4161 = vtanh.f32 %v2684_v23  ;;  %v2990_v23 = vld [vmem:[%s5172_s12 + $0x20] sm:$0xff] }
0x1a7d   :  { %4163 = vtanh.f32 %v2683_v11  ;;  %v2991_v11 = vld [vmem:[%s5172_s12 + $0x28] sm:$0xff] }
0x1a86   :  { %v4162_v25 = vpop.eup %4161 }
0x1a87   :  { %v4164_v19 = vpop.eup %4163  ;;  %v2688_v37 = vadd.f32 1.0, %v4162_v25  ;;  %v4004_v25 = vpack.c.bf16 %v2991_v11, %v2990_v23 }
0x1a88   :  { %v2687_v52 = vadd.f32 1.0, %v4164_v19  ;;  %v2993_v19 = vld [vmem:[%s5172_s12 + $0x38] sm:$0xff] }
0x1a89   :  { %v2690_v60 = vmul.f32 0.5, %v2688_v37 }
0x1a8a   :  { %v2689_v39 = vmul.f32 0.5, %v2687_v52  ;;  %v2890_v52 = vld [vmem:[%s5174_s14] sm:$0x1f] }
0x1a8b   :  { %v2692_v61 = vmul.f32 %v2690_v60, %v2672_v15  ;;  %v3995_v15 = vpack.c.bf16 %v2901_v20, %v2900_v17  ;;  %v2978_v60 = vrot.slane %v2890_v52, %v4395_v6  ;;  %v3080_v6 = vld [vmem:[%s5173_s13 + $0x10] sm:$0xff] }
0x1a8c   :  { %v2691_v5 = vmul.f32 %v2689_v39, %v2667_v21  ;;  %v2983_v39 = vrot.slane %v2890_v52, %v4401_v8  ;;  %v3081_v8 = vld [vmem:[%s5173_s13 + $0x18] sm:$0xff] }
0x1a8e   :  { %3686 = vmatprep.mubr.f32.mxu1 %v2691_v5 }
0x1a8f   :  { %3687 = vmatmul.mubr.f32.vlgmr.msra.gmra.mrb[26].mxu1 %v2692_v61 }
0x1a90   :  { %3738 = vmatprep.mubr.msk.f32.mxu1 %vm4202_vm6, %v4197_v38 }
0x1b62   :  { %v3688_v47 = vpop.f32.mrb[26].mxu1 }
0x1b63   :  { %v2776_v35 = vpop.f32.mrb[27].mxu1 }
0x1b64   :  { %v2784_v9 = vadd.f32 %v2776_v35, %v4969_v7  ;;  %v2815_v7 = vld [vmem:[%s5170_s10 + $0x10] sm:$0xff] }
0x1b65   :  { %v3989_v27 = vpack.c.bf16 %v2816_v44, %v2815_v7 }
0x1b66   :  { %v2789_v2 = vadd.f32 %v2788_v31, %v2784_v9  ;;  %v3078_v9 = vld [vmem:[%s5173_s13] sm:$0xff] }
0x1b67   :  { %3990 = vmatpush3.bf16.msra.mxu0 %v3989_v27 }
0x1b68   :  { %v2790_v41 = vsel %vm164_vm1, %v2789_v2, 0.0  ;;  %3991 = vmatprep.subr.bf16.mxu0 %v4196_v3 }
0x1b69   :  { %2791 = vadd.xlane.f32.xlu0 %v2790_v41 }
0x1bf6   :  { %v2792_v50 = vpop.xlane.xlu0 %2791 }
0x1bf7   :  { %v2793_v42 = vmul.f32 0.03125, %v2792_v50  ;;  %v4013_v50 = vpack.c.bf16 %v3081_v8, %v3080_v6 }
0x1bf9   :  { %v2794_v29 = vsub.f32 %v2789_v2, %v2793_v42  ;;  %v3079_v2 = vld [vmem:[%s5173_s13 + $0x8] sm:$0xff]  ;;  %v3070_v42 = vrot.slane %v2890_v52, %v4692_v36  ;;  %s4172_s13 = scalar_lea.vmem %s3167_s23, 32 }
0x1bfa   :  { %v4010_v41 = vpack.c.bf16 %v3079_v2, %v3078_v9  ;;  %p4173_p0 = scmp.ne.s32.totalorder %s3167_s23, %s4172_s13  ;;  %p4178_p2 = scmp.lt.s32.totalorder %s4172_s13, %s4172_s13 }
0x1bfb   :  { %v2795_v51 = vmul.f32 %v2794_v29, %v2794_v29 }
0x1bfc   :  { %4011 = vmatpush3.bf16.msra.mxu1 %v4010_v41  ;;  %p4179_p3 = por %p4178_p2, %p4177_p1 }
0x1bfd   :  { %v2796_v26 = vsel %vm164_vm1, %v2795_v51, 0.0  ;;  %4012 = vmatprep.subr.bf16.mxu1 %v4196_v3 }
0x1bfe   :  { %2797 = vadd.xlane.f32.xlu1 %v2796_v26  ;;  %p4180_p4 = pnand %p4179_p3, %p4173_p0 }
0x1c00   :  { %4014 = vmatpush3.bf16.msra.mxu1 %v4013_v50 }
0x1c8b   :  { %v2798_v18 = vpop.xlane.xlu1 %2797 }
0x1c8c   :  { %v2799_v28 = vmul.f32 0.03125, %v2798_v18 }
0x1c8e   :  { %v2800_v1 = vadd.f32 1e-05, %v2799_v28 }
0x1c90   :  { %4165 = vrsqrt.f32 %v2800_v1 }
0x1c9a   :  { %v4166_v49 = vpop.eup %4165 }
0x1c9b   :  { %v2802_v54 = vmul.f32 %v4166_v49, %v2794_v29  ;;  %v3075_v29 = vrot.slane %v2890_v52, %v4695_v40 }
0x1c9d   :  { %v2807_v56 = vmul.f32 %v2806_v14, %v2802_v54 }
0x1c9f   :  { %v2812_v59 = vadd.f32 %v2811_v53, %v2807_v56 }
0x1ca1   :  { %3698 = vmatmul.mubr.msk.f32.vlgmr.msra.gmra.mrb[24].mxu0 %vm164_vm1, %v2812_v59 }
0x1ca2   :  { %3708 = vmatprep.mubr.msk.f32.mxu0 %vm4202_vm6, %v4197_v38  ;;  %3993 = vmatpush3.bf16.msra.mxu0 %v3992_v55 }
0x1ca3   :  { %3994 = vmatprep.subr.bf16.mxu0 %v4196_v3 }
0x1ca6   :  { %3996 = vmatpush3.bf16.msra.mxu0 %v3995_v15 }
0x1ca7   :  { %3997 = vmatprep.subr.bf16.mxu0 %v4196_v3 }
0x1d74   :  { %v2886_v62 = vpop.f32.mrb[24].mxu0 }
0x1d75   :  { %v2891_v0 = vmul.f32 %v2886_v62, %v2886_v62  ;;  %v3699_v10 = vpop.f32.mrb[25].mxu0 }
0x1d77   :  { %v2892_v12 = vsel %vm168_vm2, %v2891_v0, 0.0 }
0x1d78   :  { %2893 = vadd.xlane.f32.xlu0 %v2892_v12 }
0x1e05   :  { %v2894_v22 = vpop.xlane.xlu0 %2893 }
0x1e06   :  { %v2895_v21 = vmax.f32 %v2894_v22, 1e-24 }
0x1e08   :  { %4167 = vrsqrt.f32 %v2895_v21 }
0x1e12   :  { %v4168_v63 = vpop.eup %4167 }
0x1e13   :  { %v2897_v32 = vmul.f32 %v4168_v63, %v2886_v62 }
0x1e15   :  { %3709 = vmatmul.mubr.msk.f32.vlgmr.msra.gmra.mrb[26].mxu0 %vm164_vm1, %v2897_v32 }
0x1e16   :  { %3999 = vmatpush3.bf16.msra.mxu0 %v3998_v46  ;;  %3727 = vmatprep.mubr.msk.f32.mxu0 %vm4202_vm6, %v4197_v38  ;;  %v2992_v38 = vld [vmem:[%s5172_s12 + $0x30] sm:$0xff] }
0x1e17   :  { %4000 = vmatprep.subr.bf16.mxu0 %v4196_v3  ;;  %v4007_v37 = vpack.c.bf16 %v2993_v19, %v2992_v38 }
0x1e1a   :  { %4002 = vmatpush3.bf16.msra.mxu0 %v4001_v34 }
0x1e1b   :  { %4003 = vmatprep.subr.bf16.mxu0 %v4196_v3 }
0x1e1e   :  { %4005 = vmatpush3.bf16.msra.mxu0 %v4004_v25 }
0x1e1f   :  { %4006 = vmatprep.subr.bf16.mxu0 %v4196_v3  ;;  %v3085_v3 = vrot.slane %v2890_v52, %v4449_v57 }
0x1e22   :  { %4008 = vmatpush3.bf16.msra.mxu0 %v4007_v37 }
0x1ee8   :  { %v2971_v5 = vpop.f32.mrb[26].mxu0 }
0x1ee9   :  { %v2979_v61 = vmul.f32 %v2978_v60, %v2971_v5  ;;  %v3710_v47 = vpop.f32.mrb[27].mxu0 }
0x1eeb   :  { %v2984_v31 = vadd.f32 %v2983_v39, %v2979_v61 }
0x1eed   :  { %v2985_v35 = vmax.f32 %v2984_v31, 0.0 }
0x1eef   :  { %3728 = vmatmul.mubr.msk.f32.vlgmr.msra.gmra.mrb[28].mxu0 %vm81_vm0, %v2985_v35 }
0x1fc2   :  { %v3063_v51 = vpop.f32.mrb[28].mxu0 }
0x1fc3   :  { %v3071_v26 = vmul.f32 %v3070_v42, %v3063_v51  ;;  %v3729_v4 = vpop.f32.mrb[29].mxu0 }
0x1fc5   :  { %v3076_v13 = vadd.f32 %v3075_v29, %v3071_v26 }
0x1fc7   :  { %v3077_v48 = vmax.f32 %v3076_v13, 0.0 }
0x1fc9   :  { %3739 = vmatmul.mubr.msk.f32.vlgmr.msra.gmra.mrb[28].mxu1 %vm164_vm1, %v3077_v48 }
0x209c   :  { %v3155_v7 = vpop.f32.mrb[28].mxu1 }
0x209d   :  { %v3156_v44 = vadd.f32 %v3155_v7, %v3085_v3  ;;  %v3740_v27 = vpop.f32.mrb[29].mxu1 }
0x209f   :  { %3159 = vst [vmem:[#allocation2] sm:$0x3] %v3156_v44 }
0x20a0   :  { %4183 = shalt.err (!%p4180_p4)
}
0x20a1   :  { %s4184_s25 = scalar_lea.hbm %s5175_s15, 32 }
0x20a2   :  { %p4185_p5 = scmp.ne.s32.totalorder %s5175_s15, %s4184_s25  ;;  %p4188_p6 = scmp.lt.u32.totalorder %s4184_s25, %s5175_s15 }
0x20a4   :  { %p4190_p7 = pnand %p4188_p6, %p4185_p5 }
0x20a6   :  { %4193 = shalt.err (!%p4190_p7)
}
0x20a7   :  { %3169 = dma.vmem_to_hbm [thread:$0]  %s3167_s23, 32, %s5175_s15, [#allocation3]  }
0x20a8   :  { %4194 = dma.done.wait [#allocation3], 32  }
0x20a9   :  { %4195 = vsyncadd [#allocation3], 4294967264 }
0x20aa   :  { %3173 = vsyncpa [#allocation3], 1 }

</bundles_post_ra>
